<compile_context>
chip_gen: v6e
topology: v6e:2x2x1
jax: 0.10.0
libtpu: 0.0.40
codegen_flags: <defaults>
</compile_context>

<pallas_src>
import jax
import jax.numpy as jnp
from jax.experimental import pallas as pl
from jax.experimental.pallas import tpu as pltpu

IMG_DIM = 64
LATENT_DIM = 32
HIDDEN = 400           # fixed by the module definition
NEG_SLOPE = 0.01       # nn.LeakyReLU default


def _leaky_relu(h):
    return jnp.where(h > 0, h, NEG_SLOPE * h)


def _cdiv(a, b):
    return -(-a // b)


def _round_up(n, m):
    return _cdiv(n, m) * m


def bigan_disc_kernel(xz_ref, w1_ref, b1_ref, w2_ref, b2_ref,
                      w3_ref, b3_ref, w4_ref, b4_ref, out_ref):
    # Layer 1: single fused K=96 matmul (the concat was done in the wrapper).
    h = _leaky_relu(
        jnp.dot(xz_ref[...], w1_ref[...], preferred_element_type=jnp.float32)
        + b1_ref[...])
    # Layers 2 and 3.
    h = _leaky_relu(
        jnp.dot(h, w2_ref[...], preferred_element_type=jnp.float32) + b2_ref[...])
    h = _leaky_relu(
        jnp.dot(h, w3_ref[...], preferred_element_type=jnp.float32) + b3_ref[...])
    # Output layer (400 -> 1): VPU multiply + lane (XLU) reduction + EUP sigmoid
    # instead of a >99%-wasted (tile, 400) @ (400, 1) MXU pass.
    logits = jnp.sum(h * w4_ref[...], axis=-1, keepdims=True) + b4_ref[...]
    out_ref[...] = jax.nn.sigmoid(logits).astype(out_ref.dtype)


def _choose_tiling(batch, bm):
    """Pick (tile, padded_batch): tile % 8 == 0, padded_batch % tile == 0.

    Priorities:
      * >= 2 grid steps whenever batch >= 16 so both v7x TensorCores get work
        under dimension_semantics=("parallel",).
      * Tile capped at `bm` rows (amortizes the ~0.35 us per-step overhead
        while keeping the MXU M dimension well filled for large batches).
      * Zero-row padding < 8 rows per grid step (no grossly padded last tile).
    """
    b8 = _round_up(max(batch, 1), 8)
    n_steps = max(_cdiv(b8, bm), 2 if b8 >= 16 else 1)
    tile = _round_up(_cdiv(b8, n_steps), 8)
    return tile, n_steps * tile


def _vmem_limit_bytes(tile, in_dim):
    """Computed VMEM budget (documents the v7x 64 MiB physical headroom)."""
    f32 = 4
    weights = ((in_dim + 2 * HIDDEN) * HIDDEN + HIDDEN) * f32 \
        + (3 * HIDDEN + 1) * f32                      # single-buffered residents
    io = 2 * tile * (in_dim + 1) * f32                # double-buffered xz / out tiles
    live = 8 * tile * HIDDEN * f32                    # generous slack for h temporaries
    return int(max(weights + io + live + (4 << 20), 32 << 20))


def _resident(arr):
    """Full-array block, constant index map, single pipeline buffer."""
    kwargs = {}
    if hasattr(pl, "Buffered"):
        # Constant index map -> the second pipeline buffer would never be used.
        kwargs["pipeline_mode"] = pl.Buffered(1)
    return pl.BlockSpec(arr.shape, lambda i: (0,) * arr.ndim, **kwargs)


def bigan_discriminator(x, z, params, *, bm=512):
    """x: (B, img_dim) f32, z: (B, latent_dim) f32 -> sigmoid outputs (B, 1) f32."""
    (w1, b1, w2, b2, w3, b3, w4, b4) = params
    batch = x.shape[0]
    in_dim = x.shape[1] + z.shape[1]

    # Fuse the concat into one layer-1 operand: a single K=96 MXU pass instead
    # of two underfilled K=64 / K=32 passes.  The (B, 96) HBM round trip is
    # trivial next to the three (tile, 400) matmuls.
    xz = jnp.concatenate([x, z], axis=1)
    # Final (HIDDEN, 1) weight as a row vector for the VPU/XLU reduction head.
    w4r = w4.reshape(1, HIDDEN)

    tile, padded_b = _choose_tiling(batch, bm)
    if padded_b != batch:
        xz = jnp.pad(xz, ((0, padded_b - batch), (0, 0)))

    out = pl.pallas_call(
        bigan_disc_kernel,
        out_shape=jax.ShapeDtypeStruct((padded_b, 1), jnp.float32),
        grid=(padded_b // tile,),
        in_specs=[
            pl.BlockSpec((tile, in_dim), lambda i: (i, 0)),   # xz tile over batch
            _resident(w1), _resident(b1),
            _resident(w2), _resident(b2),
            _resident(w3), _resident(b3),
            _resident(w4r), _resident(b4),
        ],
        out_specs=pl.BlockSpec((tile, 1), lambda i: (i, 0)),
        compiler_params=pltpu.CompilerParams(
            dimension_semantics=("parallel",),
            vmem_limit_bytes=_vmem_limit_bytes(tile, in_dim)),
    )(xz, w1, b1, w2, b2, w3, b3, w4r, b4)

    return out[:batch]


def init_params(key, img_dim, latent_dim):
    """Deterministic synthetic init (PyTorch-Linear-style uniform bounds)."""
    dims = [(img_dim + latent_dim, HIDDEN),
            (HIDDEN, HIDDEN),
            (HIDDEN, HIDDEN),
            (HIDDEN, 1)]
    params = []
    for (fan_in, fan_out) in dims:
        key, kw, kb = jax.random.split(key, 3)
        bound = 1.0 / jnp.sqrt(fan_in)
        w = jax.random.uniform(kw, (fan_in, fan_out), jnp.float32, -bound, bound)
        b = jax.random.uniform(kb, (1, fan_out), jnp.float32, -bound, bound)
        params += [w, b]
    return tuple(params)


def reference_forward(x, z, params):
    (w1, b1, w2, b2, w3, b3, w4, b4) = params
    h = jnp.concatenate([x, z], axis=1)
    for w, b in ((w1, b1), (w2, b2), (w3, b3)):
        h = _leaky_relu(h @ w + b)
    return jax.nn.sigmoid(h @ w4 + b4)


if __name__ == "__main__":
    key = jax.random.PRNGKey(0)
    kp, kx, kz = jax.random.split(key, 3)
    params = init_params(kp, IMG_DIM, LATENT_DIM)

    # B=16: 2-step grid (exercises v7x dual-core path at small batch).
    # B=6 : ragged tiny batch (single padded tile).
    # B=300: ragged mid-size batch (2 steps of 152 rows, 4 padded rows total).
    for batch in (16, 6, 300):
        kx, kxi = jax.random.split(kx)
        kz, kzi = jax.random.split(kz)
        x = jax.random.normal(kxi, (batch, IMG_DIM), jnp.float32)
        z = jax.random.normal(kzi, (batch, LATENT_DIM), jnp.float32)
        out = jax.block_until_ready(bigan_discriminator(x, z, params))
        ref = reference_forward(x, z, params)
        assert out.shape == (batch, 1)
        assert jnp.allclose(out, ref, atol=1e-5, rtol=1e-5), f"mismatch at B={batch}"

    print("KERNEL_OK")
</pallas_src>

<mosaic_0001>
module attributes {stable_mosaic.version = 11 : i64} {
  func.func @bigan_disc_kernel(%arg0: i32, %arg1: memref<8x96xf32, #tpu.memory_space<vmem>>, %arg2: memref<96x400xf32, #tpu.memory_space<vmem>>, %arg3: memref<1x400xf32, #tpu.memory_space<vmem>>, %arg4: memref<400x400xf32, #tpu.memory_space<vmem>>, %arg5: memref<1x400xf32, #tpu.memory_space<vmem>>, %arg6: memref<400x400xf32, #tpu.memory_space<vmem>>, %arg7: memref<1x400xf32, #tpu.memory_space<vmem>>, %arg8: memref<1x400xf32, #tpu.memory_space<vmem>>, %arg9: memref<1x1xf32, #tpu.memory_space<vmem>>, %arg10: memref<8x1xf32, #tpu.memory_space<vmem>>) attributes {dimension_semantics = [#tpu.dimension_semantics<parallel>], iteration_bounds = array<i64: 2>, scalar_prefetch = 0 : i64, scratch_operands = 0 : i64, tpu.core_type = #tpu.core_type<tc>, window_params = [{transform_indices = @transform_0, window_bounds = array<i64: 8, 96>}, {pipeline_mode = #tpu.pipeline_mode<synchronous>, transform_indices = @transform_1, window_bounds = array<i64: 96, 400>}, {pipeline_mode = #tpu.pipeline_mode<synchronous>, transform_indices = @transform_2, window_bounds = array<i64: 1, 400>}, {pipeline_mode = #tpu.pipeline_mode<synchronous>, transform_indices = @transform_3, window_bounds = array<i64: 400, 400>}, {pipeline_mode = #tpu.pipeline_mode<synchronous>, transform_indices = @transform_4, window_bounds = array<i64: 1, 400>}, {pipeline_mode = #tpu.pipeline_mode<synchronous>, transform_indices = @transform_5, window_bounds = array<i64: 400, 400>}, {pipeline_mode = #tpu.pipeline_mode<synchronous>, transform_indices = @transform_6, window_bounds = array<i64: 1, 400>}, {pipeline_mode = #tpu.pipeline_mode<synchronous>, transform_indices = @transform_7, window_bounds = array<i64: 1, 400>}, {pipeline_mode = #tpu.pipeline_mode<synchronous>, transform_indices = @transform_8, window_bounds = array<i64: 1, 1>}, {transform_indices = @transform_9, window_bounds = array<i64: 8, 1>}]} {
    %c0 = arith.constant 0 : index
    %c0_0 = arith.constant 0 : index
    %0 = vector.load %arg1[%c0, %c0_0] : memref<8x96xf32, #tpu.memory_space<vmem>>, vector<8x96xf32>
    %c0_1 = arith.constant 0 : index
    %c0_2 = arith.constant 0 : index
    %1 = vector.load %arg2[%c0_1, %c0_2] : memref<96x400xf32, #tpu.memory_space<vmem>>, vector<96x400xf32>
    %cst = arith.constant dense<0.000000e+00> : vector<8x400xf32>
    %2 = tpu.matmul %0, %1, %cst {dimension_numbers = #tpu.dot_dimension_numbers<[1], [0], [0], [1], [0, 0, 1, 1], [], []>} : vector<8x96xf32>, vector<96x400xf32>, vector<8x400xf32> -> vector<8x400xf32>
    %c0_3 = arith.constant 0 : index
    %c0_4 = arith.constant 0 : index
    %3 = vector.load %arg3[%c0_3, %c0_4] : memref<1x400xf32, #tpu.memory_space<vmem>>, vector<1x400xf32>
    %4 = vector.broadcast %3 : vector<1x400xf32> to vector<8x400xf32>
    %5 = arith.addf %2, %4 : vector<8x400xf32>
    %cst_5 = arith.constant 0.000000e+00 : f32
    %6 = vector.broadcast %cst_5 : f32 to vector<8x400xf32>
    %7 = arith.cmpf ogt, %5, %6 : vector<8x400xf32>
    %cst_6 = arith.constant 0.00999999977 : f32
    %8 = vector.broadcast %cst_6 : f32 to vector<8x400xf32>
    %9 = arith.mulf %8, %5 : vector<8x400xf32>
    %10 = arith.select %7, %5, %9 : vector<8x400xi1>, vector<8x400xf32>
    %c0_7 = arith.constant 0 : index
    %c0_8 = arith.constant 0 : index
    %11 = vector.load %arg4[%c0_7, %c0_8] : memref<400x400xf32, #tpu.memory_space<vmem>>, vector<400x400xf32>
    %cst_9 = arith.constant dense<0.000000e+00> : vector<8x400xf32>
    %12 = tpu.matmul %10, %11, %cst_9 {dimension_numbers = #tpu.dot_dimension_numbers<[1], [0], [0], [1], [0, 0, 1, 1], [], []>} : vector<8x400xf32>, vector<400x400xf32>, vector<8x400xf32> -> vector<8x400xf32>
    %c0_10 = arith.constant 0 : index
    %c0_11 = arith.constant 0 : index
    %13 = vector.load %arg5[%c0_10, %c0_11] : memref<1x400xf32, #tpu.memory_space<vmem>>, vector<1x400xf32>
    %14 = vector.broadcast %13 : vector<1x400xf32> to vector<8x400xf32>
    %15 = arith.addf %12, %14 : vector<8x400xf32>
    %cst_12 = arith.constant 0.000000e+00 : f32
    %16 = vector.broadcast %cst_12 : f32 to vector<8x400xf32>
    %17 = arith.cmpf ogt, %15, %16 : vector<8x400xf32>
    %cst_13 = arith.constant 0.00999999977 : f32
    %18 = vector.broadcast %cst_13 : f32 to vector<8x400xf32>
    %19 = arith.mulf %18, %15 : vector<8x400xf32>
    %20 = arith.select %17, %15, %19 : vector<8x400xi1>, vector<8x400xf32>
    %c0_14 = arith.constant 0 : index
    %c0_15 = arith.constant 0 : index
    %21 = vector.load %arg6[%c0_14, %c0_15] : memref<400x400xf32, #tpu.memory_space<vmem>>, vector<400x400xf32>
    %cst_16 = arith.constant dense<0.000000e+00> : vector<8x400xf32>
    %22 = tpu.matmul %20, %21, %cst_16 {dimension_numbers = #tpu.dot_dimension_numbers<[1], [0], [0], [1], [0, 0, 1, 1], [], []>} : vector<8x400xf32>, vector<400x400xf32>, vector<8x400xf32> -> vector<8x400xf32>
    %c0_17 = arith.constant 0 : index
    %c0_18 = arith.constant 0 : index
    %23 = vector.load %arg7[%c0_17, %c0_18] : memref<1x400xf32, #tpu.memory_space<vmem>>, vector<1x400xf32>
    %24 = vector.broadcast %23 : vector<1x400xf32> to vector<8x400xf32>
    %25 = arith.addf %22, %24 : vector<8x400xf32>
    %cst_19 = arith.constant 0.000000e+00 : f32
    %26 = vector.broadcast %cst_19 : f32 to vector<8x400xf32>
    %27 = arith.cmpf ogt, %25, %26 : vector<8x400xf32>
    %cst_20 = arith.constant 0.00999999977 : f32
    %28 = vector.broadcast %cst_20 : f32 to vector<8x400xf32>
    %29 = arith.mulf %28, %25 : vector<8x400xf32>
    %30 = arith.select %27, %25, %29 : vector<8x400xi1>, vector<8x400xf32>
    %c0_21 = arith.constant 0 : index
    %c0_22 = arith.constant 0 : index
    %31 = vector.load %arg8[%c0_21, %c0_22] : memref<1x400xf32, #tpu.memory_space<vmem>>, vector<1x400xf32>
    %32 = vector.broadcast %31 : vector<1x400xf32> to vector<8x400xf32>
    %33 = arith.mulf %30, %32 : vector<8x400xf32>
    %cst_23 = arith.constant dense<0.000000e+00> : vector<8xf32>
    %34 = vector.multi_reduction <add>, %33, %cst_23 [1] : vector<8x400xf32> to vector<8xf32>
    %35 = vector.shape_cast %34 : vector<8xf32> to vector<8x1xf32>
    %c0_24 = arith.constant 0 : index
    %c0_25 = arith.constant 0 : index
    %36 = vector.load %arg9[%c0_24, %c0_25] : memref<1x1xf32, #tpu.memory_space<vmem>>, vector<1x1xf32>
    %37 = vector.broadcast %36 : vector<1x1xf32> to vector<8x1xf32>
    %38 = arith.addf %35, %37 : vector<8x1xf32>
    %39 = arith.negf %38 : vector<8x1xf32>
    %40 = math.exp %39 : vector<8x1xf32>
    %cst_26 = arith.constant 1.000000e+00 : f32
    %41 = vector.broadcast %cst_26 : f32 to vector<8x1xf32>
    %42 = arith.addf %41, %40 : vector<8x1xf32>
    %43 = arith.divf %41, %42 : vector<8x1xf32>
    %c0_27 = arith.constant 0 : index
    %c0_28 = arith.constant 0 : index
    %44 = vector.load %arg10[%c0_27, %c0_28] : memref<8x1xf32, #tpu.memory_space<vmem>>, vector<8x1xf32>
    tpu.vector_store %arg10[%c0_27, %c0_28], %43 {strides = array<i32>} : memref<8x1xf32, #tpu.memory_space<vmem>>, vector<8x1xf32>,
    return
  }
  func.func @transform_0(%arg0: i32) -> (i32, i32) {
    %c0_i32 = arith.constant 0 : i32
    %c0_i32_0 = arith.constant 0 : i32
    return %arg0, %c0_i32 : i32, i32
  }
  func.func @transform_1(%arg0: i32) -> (i32, i32) {
    %c0_i32 = arith.constant 0 : i32
    %c0_i32_0 = arith.constant 0 : i32
    %c0_i32_1 = arith.constant 0 : i32
    return %c0_i32, %c0_i32_0 : i32, i32
  }
  func.func @transform_2(%arg0: i32) -> (i32, i32) {
    %c0_i32 = arith.constant 0 : i32
    %c0_i32_0 = arith.constant 0 : i32
    %c0_i32_1 = arith.constant 0 : i32
    return %c0_i32, %c0_i32_0 : i32, i32
  }
  func.func @transform_3(%arg0: i32) -> (i32, i32) {
    %c0_i32 = arith.constant 0 : i32
    %c0_i32_0 = arith.constant 0 : i32
    %c0_i32_1 = arith.constant 0 : i32
    return %c0_i32, %c0_i32_0 : i32, i32
  }
  func.func @transform_4(%arg0: i32) -> (i32, i32) {
    %c0_i32 = arith.constant 0 : i32
    %c0_i32_0 = arith.constant 0 : i32
    %c0_i32_1 = arith.constant 0 : i32
    return %c0_i32, %c0_i32_0 : i32, i32
  }
  func.func @transform_5(%arg0: i32) -> (i32, i32) {
    %c0_i32 = arith.constant 0 : i32
    %c0_i32_0 = arith.constant 0 : i32
    %c0_i32_1 = arith.constant 0 : i32
    return %c0_i32, %c0_i32_0 : i32, i32
  }
  func.func @transform_6(%arg0: i32) -> (i32, i32) {
    %c0_i32 = arith.constant 0 : i32
    %c0_i32_0 = arith.constant 0 : i32
    %c0_i32_1 = arith.constant 0 : i32
    return %c0_i32, %c0_i32_0 : i32, i32
  }
  func.func @transform_7(%arg0: i32) -> (i32, i32) {
    %c0_i32 = arith.constant 0 : i32
    %c0_i32_0 = arith.constant 0 : i32
    %c0_i32_1 = arith.constant 0 : i32
    return %c0_i32, %c0_i32_0 : i32, i32
  }
  func.func @transform_8(%arg0: i32) -> (i32, i32) {
    %c0_i32 = arith.constant 0 : i32
    %c0_i32_0 = arith.constant 0 : i32
    %c0_i32_1 = arith.constant 0 : i32
    return %c0_i32, %c0_i32_0 : i32, i32
  }
  func.func @transform_9(%arg0: i32) -> (i32, i32) {
    %c0_i32 = arith.constant 0 : i32
    %c0_i32_0 = arith.constant 0 : i32
    return %arg0, %c0_i32 : i32, i32
  }
}

</mosaic_0001>

<bundles_post_ra>
// kernel: tpu_custom_call.1
= control target key start
LH: loop header
LB: loop body
LE: loop exit
PB: predicated region body
PF: predicated region fallthrough
CT: control target
= control target key end

     0   :  { %s2413_s0 = inlined_call_operand.hbm [shape: f32[16,96], index: 0, kind: input, shape index: {}]   ;;  %s2414_s1 = inlined_call_operand.hbm [shape: f32[96,400], index: 1, kind: input, shape index: {}]   ;;  %s2415_s2 = inlined_call_operand.vmem [shape: f32[1,400], index: 2, kind: input, shape index: {}]   ;;  %s2416_s3 = inlined_call_operand.hbm [shape: f32[400,400], index: 3, kind: input, shape index: {}]   ;;  %s2417_s4 = inlined_call_operand.vmem [shape: f32[1,400], index: 4, kind: input, shape index: {}]   ;;  %s2418_s5 = inlined_call_operand.hbm [shape: f32[400,400], index: 5, kind: input, shape index: {}]   ;;  %s2419_s6 = inlined_call_operand.vmem [shape: f32[1,400], index: 6, kind: input, shape index: {}]   ;;  %s2420_s7 = inlined_call_operand.hbm [shape: f32[1,400], index: 7, kind: input, shape index: {}]   ;;  %s2421_s8 = inlined_call_operand.<no memory space> [shape: f32[1,1], index: 8, kind: input, shape index: {}]   ;;  %s2422_s9 = inlined_call_operand.vmem [shape: f32[16,1], index: 9, kind: output, shape index: {}]  }
   0x1   :  { %v14_v0 = vstv %s2421_s8 }
   0x2   :  { %15 = vst [vmem:[#allocation2] sm:$0x1] %v14_v0 }
   0x3   :  { %16 = vsyncpa [#allocation4], 0 }
   0x4   :  { %18 = vsyncpa [#allocation4 + $0x1], 0 }
   0x5   :  { %19 = vsyncpa [#allocation6], 0 }
   0x6   :  { %20 = vsyncpa [#allocation9], 0  ;;  %s2179_s11 = smov 0   ;;  %s2181_s12 = smov 0  }
   0x7   :  { %s2183_s13 = smov 0   ;;  %s2185_s14 = smov 0  }
   0x8 LB: > { %s2118_s8 = smov [#allocation5]   ;;  %s2200_s16 = sadd.s32 4294967295, %s2116_s14   ;;  %s2116_s14 = sphi %s2185_s14, %s2439_s14   ;;  %s2112_s13 = sphi %s2183_s13, %s2438_s13   ;;  %s2108_s12 = sphi %s2181_s12, %s2437_s12   ;;  %s2104_s11 = sphi %s2179_s11, %s2436_s11  }
   0x9   : > { %s263_s15 = sshll.u32 %s2118_s8, 4  ;;  %p1830_p0 = scmp.ge.s32.totalorder %s2116_s14, 1  ;;  %s264_s15 = int_to_ptr.vmem [resolvable:$true] %s263_s15 }
   0xa   : > { %p2423_p1 = scmp.eq.s32.totalorder %s2200_s16, 0  ;;  %p251_p2 = scmp.lt.s32.totalorder %s2116_s14, 3 }
   0xb   : > { %s2119_s18 = smov [#allocation8]   ;;  %s2120_s21 = smov [#allocation7]  }
   0xc   : > { %p2205_p3 = pnand %p1830_p0, %p251_p2  ;;  %s295_s19 = sshll.u32 %s2119_s18, 4  ;;  %s2217_s19 = int_to_ptr.vmem [resolvable:$true] %s295_s19 }
   0xd   : > { %s279_s22 = sshll.u32 %s2120_s21, 4  ;;  %s1953_s23 = scalar_lea.vmem %s264_s15, 6144  ;;  %s2219_s22 = int_to_ptr.vmem [resolvable:$true] %s279_s22 }
   0xe   : > { %s2426_s17 = scalar_select %p2205_p3, 1, 0 }
   0xf   : > { %p1873_p4 = pneg %p2205_p3  ;;  %p1954_p7 = scmp.ne.s32.totalorder %s264_s15, %s1953_s23 }
  0x10   : > { %p1961_p10 = scmp.lt.s32.totalorder %s264_s15, %s264_s15  ;;  %p1962_p11 = scmp.lt.s32.totalorder %s1953_s23, %s1953_s23 }
  0x11   : > { %p2213_p5 = pnand %p1873_p4, %p2423_p1 }
  0x12   : > { %p1963_p12 = por %p1962_p11, %p1961_p10 }
  0x13   : > { %p1944_p6 = pneg %p2213_p5 }
  0x15   : > { %p1956_p8 = pnand %p1954_p7, %p1944_p6 }
  0x17   : > { %p1957_p9 = pneg %p1956_p8 }
  0x19   : > { %p1964_p13 = pnand %p1963_p12, %p1957_p9 }
  0x1b   : > { %1967 = shalt.err (!%p1964_p13)
}
  0x1c   : > { %s2121_s24 = smov 512   ;;  %s2122_s25 = smov 32  }
  0x1d   : > { %1876 = dma.hbm_to_vmem [thread:$0]  (!%p2213_p5), %s2414_s1, 6144, %s264_s15, [#allocation6], %s2121_s24, %s2121_s24, %s2122_s25  }
  0x1e   : > { %s1979_s28 = scalar_lea.vmem %s2217_s19, 25600  ;;  %p1987_p7 = scmp.lt.s32.totalorder %s2217_s19, %s2217_s19 }
  0x1f   : > { %p1980_p0 = scmp.ne.s32.totalorder %s2217_s19, %s1979_s28  ;;  %p1988_p8 = scmp.lt.s32.totalorder %s1979_s28, %s1979_s28 }
  0x21   : > { %p1982_p2 = pnand %p1980_p0, %p1944_p6  ;;  %p1989_p9 = por %p1988_p8, %p1987_p7 }
  0x23   : > { %p1983_p4 = pneg %p1982_p2 }
  0x25   : > { %p1990_p10 = pnand %p1989_p9, %p1983_p4 }
  0x27   : > { %1993 = shalt.err (!%p1990_p10)
}
  0x28   : > { %1882 = dma.hbm_to_vmem [thread:$0]  (!%p2213_p5), %s2418_s5, 25600, %s2217_s19, [#allocation9], %s2121_s24, %s2121_s24, %s2122_s25  }
  0x29   : > { %s2005_s10 = scalar_lea.vmem %s2219_s22, 25600  ;;  %p2013_p0 = scmp.lt.s32.totalorder %s2219_s22, %s2219_s22 }
  0x2a   : > { %p2006_p11 = scmp.ne.s32.totalorder %s2219_s22, %s2005_s10  ;;  %p2014_p2 = scmp.lt.s32.totalorder %s2005_s10, %s2005_s10 }
  0x2c   : > { %p2008_p12 = pnand %p2006_p11, %p1944_p6  ;;  %p2015_p4 = por %p2014_p2, %p2013_p0 }
  0x2e   : > { %p2009_p13 = pneg %p2008_p12 }
  0x30   : > { %p2016_p7 = pnand %p2015_p4, %p2009_p13 }
  0x32   : > { %2019 = shalt.err (!%p2016_p7)
}
  0x33   : > { %1879 = dma.hbm_to_vmem [thread:$0]  (!%p2213_p5), %s2416_s3, 25600, %s2219_s22, [#allocation6], %s2121_s24, %s2121_s24, %s2122_s25  }
  0x34   : > { %s2123_s18 = smov [#allocation10]  }
  0x35   : > { %s312_s19 = sshll.u32 %s2123_s18, 4  ;;  %s313_s19 = int_to_ptr.vmem [resolvable:$true] %s312_s19 }
  0x36   : > { %s2031_s21 = scalar_lea.vmem %s313_s19, 64  ;;  %p2039_p11 = scmp.lt.s32.totalorder %s313_s19, %s313_s19 }
  0x37   : > { %p2032_p8 = scmp.ne.s32.totalorder %s313_s19, %s2031_s21  ;;  %p2040_p12 = scmp.lt.s32.totalorder %s2031_s21, %s2031_s21 }
  0x39   : > { %p2034_p9 = pnand %p2032_p8, %p1944_p6  ;;  %p2041_p13 = por %p2040_p12, %p2039_p11 }
  0x3b   : > { %p2035_p10 = pneg %p2034_p9 }
  0x3d   : > { %p2042_p0 = pnand %p2041_p13, %p2035_p10 }
  0x3f   : > { %2045 = shalt.err (!%p2042_p0)
}
  0x40   : > { %1885 = dma.hbm_to_vmem [thread:$0]  (!%p2213_p5), %s2420_s7, 64, %s313_s19, [#allocation9]  }
  0x41   : > { %s2266_s22 = sadd.s32 1, %s2116_s14   ;;  %s33_s20 = sadd.s32 1, %s2112_s13 }
  0x42   : > { %s30_s24 = ssub.s32 %s2116_s14, %s2266_s22  ;;  %p40_p6 = scmp.ne.s32.totalorder %s2112_s13, %s2108_s12 }
  0x43   : > { %p31_p2 = scmp.eq.s32.totalorder %s30_s24, 0  ;;  %p41_p4 = scmp.eq.s32.totalorder %s2116_s14, 0 }
  0x44   : > { %p46_p7 = scmp.ne.s32.totalorder %s2108_s12, %s2104_s11  ;;  %p1894_p8 = scmp.lt.s32.totalorder %s2116_s14, 2 }
  0x45   : > { %s2278_s25 = scalar_select %p31_p2, %s2112_s13, %s33_s20  }
  0x46   : > { %p42_p9 = por %p41_p4, %p40_p6  ;;  %p2282_p10 = por %p2423_p1, %p46_p7 }
  0x47   : > { %s326_s28 = sand.u32 1, %s2112_s13   ;;  %s1837_s29 = sshll.u32 %s2116_s14, 7 }
  0x48   : > { %s2428_s27 = scalar_select %p2282_p10, 1, 0 }
  0x49   : > { %s1836_s30 = sshll.u32 %s326_s28, 3  ;;  %s2291_s15 = scalar_lea.hbm %s2413_s0, %s1837_s29 }
  0x4a   : > { %s330_s11 = scalar_lea.vmem [#allocation3], %s1836_s30  ;;  %p2293_p5 = pnand %p1894_p8, %p42_p9 }
  0x4b   : > { %s337_s18 = sshll.u32 %s330_s11, 4  ;;  %s327_s21 = scalar_lea.sflag [#allocation4], %s326_s28  ;;  %s338_s18 = int_to_ptr.vmem [resolvable:$true] %s337_s18 }
  0x4c   : > { %s2046_s23 = scalar_lea.hbm %s2291_s15, 128  ;;  %p2048_p12 = pneg %p2293_p5 }
  0x4d   : > { %p2047_p11 = scmp.ne.s32.totalorder %s2291_s15, %s2046_s23  ;;  %s2051_s20 = scalar_lea.hbm %s2413_s0, 256 }
  0x4e   : > { %p2052_p6 = scmp.lt.s32.totalorder %s2291_s15, %s2413_s0  ;;  %p2053_p2 = scmp.lt.s32.totalorder %s2051_s20, %s2046_s23 }
  0x4f   : > { %p2049_p13 = pnand %p2048_p12, %p2047_p11 }
  0x50   : > { %p2054_p4 = por %p2053_p2, %p2052_p6 }
  0x51   : > { %p2050_p0 = pneg %p2049_p13 }
  0x53   : > { %p2055_p7 = pnand %p2054_p4, %p2050_p0 }
  0x55   : > { %2058 = shalt.err (!%p2055_p7)
}
  0x56   : > { %s2059_s30 = scalar_lea.vmem %s338_s18, 128  ;;  %s2124_s28 = smov [#allocation3]  }
  0x57   : > { %p2060_p8 = scmp.ne.s32.totalorder %s338_s18, %s2059_s30  ;;  %s2064_s10 = sshll.u32 %s2124_s28, 4  ;;  %s2065_s10 = int_to_ptr.vmem [resolvable:$false] %s2064_s10 }
  0x58   : > { %s2066_s8 = scalar_lea.vmem %s2065_s10, 256  ;;  %p2067_p11 = scmp.lt.s32.totalorder %s338_s18, %s2065_s10 }
  0x59   : > { %p2062_p9 = pnand %p2060_p8, %p2048_p12  ;;  %p2068_p13 = scmp.lt.s32.totalorder %s2066_s8, %s2059_s30 }
  0x5b   : > { %p2063_p1 = pneg %p2062_p9  ;;  %p2069_p10 = por %p2068_p13, %p2067_p11 }
  0x5d   : > { %p2070_p3 = pnand %p2069_p10, %p2063_p1 }
  0x5f   : > { %2073 = shalt.err (!%p2070_p3)
}
  0x60   : > { %1889 = dma.hbm_to_vmem [thread:$0]  (!%p2293_p5), %s2291_s15, 128, %s338_s18, %s327_s21  }
  0x61   : > { %p2430_p0 = scmp.ne.s32.totalorder %s2426_s17, 0 }
  0x62   : > { %s348_s11 = sand.u32 (!%p2430_p0), 1, %s2108_s12   ;;  %p2431_p12 = scmp.ne.s32.totalorder (!%p2430_p0), %s2428_s27, 0 }
  0x63   : > { %346 = sbr.rel (%p2430_p0) target bundleno = 1050 (0x41a), region = 56  ;;  %s2314_s23 = sshll.u32 (!%p2430_p0), %s348_s11, 3 }
  0x64   : > { %s349_s14 = scalar_lea.sflag (!%p2430_p0), [#allocation4], %s348_s11  ;;  %s352_s26 = scalar_lea.vmem (!%p2430_p0), [#allocation3], %s2314_s23 }
  0x68   : > { %2091 = dma.done.wait (%p2431_p12), %s349_s14, 128  }
  0x69   : > { %2093 = vsyncadd (%p2431_p12), %s349_s14, 4294967168  ;;  %p2432_p1 = scmp.eq.s32.totalorder %s2200_s16, 0 }
  0x6b   : > { %2095 = dma.done.wait (%p2432_p1), [#allocation6], 31744   ;;  %p2433_p3 = pmov %p2432_p1 }
  0x6c   : > { %p2434_p10 = pmov %p2432_p1 }
  0x6d   : > { %2097 = vsyncadd (%p2433_p3), [#allocation6], 4294935552 }
  0x6e   : > { %2099 = dma.done.wait (%p2434_p10), [#allocation9], 25664   ;;  %p2435_p5 = pmov %p2432_p1 }
  0x6f   : > { %v2125_v1 = vmov 0.0   ;;  %v452_v2 = vld [vmem:[#allocation5 + $0x168] sm:$0xff]  ;;  %v454_v3 = vld [vmem:[#allocation5 + $0x178] sm:$0xff]  ;;  %v451_v4 = vld [vmem:[#allocation5 + $0x160] sm:$0xff]  ;;  %vm477_vm0 = vcmask 785408   ;;  %vm857_vm3 = vcmask 130048  }
  0x70   : > { %2101 = vsyncadd (%p2435_p5), [#allocation9], 4294941632  ;;  %545 = vmatprep.mubr.f32.mxu0 %v2125_v1  ;;  %616 = vmatprep.mubr.f32.mxu1 %v2125_v1  ;;  %v453_v5 = vld [vmem:[#allocation5 + $0x170] sm:$0xff]  ;;  %v448_v6 = vld [vmem:[#allocation5 + $0x148] sm:$0xff]  ;;  %p402_p6 = scmp.lt.s32.totalorder %s2200_s16, 1  ;;  %vm1724_vm14 = vcmask 7168  }
  0x71   : > { %489 = vmatprep.subr.mxu0 %v452_v2  ;;  %560 = vmatprep.subr.mxu1 %v454_v3  ;;  %v450_v7 = vld [vmem:[#allocation5 + $0x158] sm:$0xff]  ;;  %v447_v8 = vld [vmem:[#allocation5 + $0x140] sm:$0xff]  ;;  %v449_v9 = vld [vmem:[#allocation5 + $0x150] sm:$0xff] }
  0x72   : > { %490 = vmatpush1.msra.mxu0 %v451_v4  ;;  %561 = vmatpush1.msra.mxu1 %v453_v5  ;;  %v444_v10 = vld [vmem:[#allocation5 + $0x128] sm:$0xff]  ;;  %v446_v11 = vld [vmem:[#allocation5 + $0x138] sm:$0xff]  ;;  %v443_v12 = vld [vmem:[#allocation5 + $0x120] sm:$0xff]  ;;  %s2441_s16 = smov (!%p402_p6, %s2200_s16), 1 }
  0x73   : > { %491 = vmatprep.subr.mxu0 %v448_v6  ;;  %562 = vmatprep.subr.mxu1 %v450_v7  ;;  %v445_v13 = vld [vmem:[#allocation5 + $0x130] sm:$0xff]  ;;  %v440_v14 = vld [vmem:[#allocation5 + $0x108] sm:$0xff]  ;;  %v442_v15 = vld [vmem:[#allocation5 + $0x118] sm:$0xff]  ;;  %s1844_s20 = sshll.u32 %s2441_s16, 3 }
  0x74   : > { %492 = vmatpush1.msra.mxu0 %v447_v8  ;;  %563 = vmatpush1.msra.mxu1 %v449_v9  ;;  %v439_v16 = vld [vmem:[#allocation5 + $0x100] sm:$0xff]  ;;  %v441_v17 = vld [vmem:[#allocation5 + $0x110] sm:$0xff]  ;;  %v436_v18 = vld [vmem:[#allocation5 + $0xe8] sm:$0xff]  ;;  %s405_s30 = scalar_lea.vmem %s2422_s9, %s1844_s20 }
  0x75   : > { %493 = vmatprep.subr.mxu0 %v444_v10  ;;  %564 = vmatprep.subr.mxu1 %v446_v11  ;;  %v438_v19 = vld [vmem:[#allocation5 + $0xf8] sm:$0xff]  ;;  %v435_v20 = vld [vmem:[#allocation5 + $0xe0] sm:$0xff]  ;;  %v437_v21 = vld [vmem:[#allocation5 + $0xf0] sm:$0xff] }
  0x76   : > { %494 = vmatpush1.msra.mxu0 %v443_v12  ;;  %565 = vmatpush1.msra.mxu1 %v445_v13  ;;  %v432_v22 = vld [vmem:[#allocation5 + $0xc8] sm:$0xff]  ;;  %v434_v23 = vld [vmem:[#allocation5 + $0xd8] sm:$0xff]  ;;  %v431_v24 = vld [vmem:[#allocation5 + $0xc0] sm:$0xff] }
  0x77   : > { %495 = vmatprep.subr.mxu0 %v440_v14  ;;  %566 = vmatprep.subr.mxu1 %v442_v15  ;;  %v433_v25 = vld [vmem:[#allocation5 + $0xd0] sm:$0xff]  ;;  %v428_v26 = vld [vmem:[#allocation5 + $0xa8] sm:$0xff]  ;;  %v430_v27 = vld [vmem:[#allocation5 + $0xb8] sm:$0xff] }
  0x78   : > { %496 = vmatpush1.msra.mxu0 %v439_v16  ;;  %567 = vmatpush1.msra.mxu1 %v441_v17  ;;  %v427_v28 = vld [vmem:[#allocation5 + $0xa0] sm:$0xff]  ;;  %v429_v29 = vld [vmem:[#allocation5 + $0xb0] sm:$0xff]  ;;  %v424_v30 = vld [vmem:[#allocation5 + $0x88] sm:$0xff] }
  0x79   : > { %497 = vmatprep.subr.mxu0 %v436_v18  ;;  %568 = vmatprep.subr.mxu1 %v438_v19  ;;  %v426_v31 = vld [vmem:[#allocation5 + $0x98] sm:$0xff]  ;;  %v423_v32 = vld [vmem:[#allocation5 + $0x80] sm:$0xff]  ;;  %v425_v33 = vld [vmem:[#allocation5 + $0x90] sm:$0xff] }
  0x7a   : > { %498 = vmatpush1.msra.mxu0 %v435_v20  ;;  %569 = vmatpush1.msra.mxu1 %v437_v21  ;;  %v420_v34 = vld [vmem:[#allocation5 + $0x68] sm:$0xff]  ;;  %v422_v35 = vld [vmem:[#allocation5 + $0x78] sm:$0xff]  ;;  %v419_v36 = vld [vmem:[#allocation5 + $0x60] sm:$0xff] }
  0x7b   : > { %499 = vmatprep.subr.mxu0 %v432_v22  ;;  %570 = vmatprep.subr.mxu1 %v434_v23  ;;  %v421_v37 = vld [vmem:[#allocation5 + $0x70] sm:$0xff]  ;;  %v416_v38 = vld [vmem:[#allocation5 + $0x48] sm:$0xff]  ;;  %v418_v39 = vld [vmem:[#allocation5 + $0x58] sm:$0xff] }
  0x7c   : > { %500 = vmatpush1.msra.mxu0 %v431_v24  ;;  %571 = vmatpush1.msra.mxu1 %v433_v25  ;;  %v415_v40 = vld [vmem:[#allocation5 + $0x40] sm:$0xff]  ;;  %v417_v41 = vld [vmem:[#allocation5 + $0x50] sm:$0xff]  ;;  %v412_v42 = vld [vmem:[#allocation5 + $0x28] sm:$0xff] }
  0x7d   : > { %501 = vmatprep.subr.mxu0 %v428_v26  ;;  %572 = vmatprep.subr.mxu1 %v430_v27  ;;  %v414_v43 = vld [vmem:[#allocation5 + $0x38] sm:$0xff]  ;;  %v411_v44 = vld [vmem:[#allocation5 + $0x20] sm:$0xff]  ;;  %v413_v45 = vld [vmem:[#allocation5 + $0x30] sm:$0xff] }
  0x7e   : > { %502 = vmatpush1.msra.mxu0 %v427_v28  ;;  %573 = vmatpush1.msra.mxu1 %v429_v29  ;;  %v408_v46 = vld [vmem:[#allocation5 + $0x8] sm:$0xff]  ;;  %v410_v47 = vld [vmem:[#allocation5 + $0x18] sm:$0xff]  ;;  %v407_v48 = vld [vmem:[#allocation5] sm:$0xff] }
  0x7f   : > { %503 = vmatprep.subr.mxu0 %v424_v30  ;;  %574 = vmatprep.subr.mxu1 %v426_v31  ;;  %v409_v49 = vld [vmem:[#allocation5 + $0x10] sm:$0xff]  ;;  %v696_v51 = vld [vmem:[#allocation7 + $0x1e8] sm:$0xff]  ;;  %v695_v52 = vld [vmem:[#allocation7 + $0x1e0] sm:$0xff] }
  0x80   : > { %504 = vmatpush1.msra.mxu0 %v423_v32  ;;  %575 = vmatpush1.msra.mxu1 %v425_v33  ;;  %v406_v50 = vld [vmem:[%s352_s26] sm:$0xff]  ;;  %v692_v53 = vld [vmem:[#allocation7 + $0x1c8] sm:$0xff]  ;;  %v691_v54 = vld [vmem:[#allocation7 + $0x1c0] sm:$0xff] }
  0x81   : > { %505 = vmatprep.subr.mxu0 %v420_v34  ;;  %576 = vmatprep.subr.mxu1 %v422_v35  ;;  %v824_v55 = vld [vmem:[#allocation7 + $0x5e8] sm:$0xff]  ;;  %v823_v56 = vld [vmem:[#allocation7 + $0x5e0] sm:$0xff] }
  0x82   : > { %506 = vmatpush1.msra.mxu0 %v419_v36  ;;  %577 = vmatpush1.msra.mxu1 %v421_v37  ;;  %v688_v57 = vld [vmem:[#allocation7 + $0x1a8] sm:$0xff]  ;;  %v687_v59 = vld [vmem:[#allocation7 + $0x1a0] sm:$0xff] }
  0x83   : > { %507 = vmatprep.subr.mxu0 %v416_v38  ;;  %578 = vmatprep.subr.mxu1 %v418_v39  ;;  %v820_v58 = vld [vmem:[#allocation7 + $0x5c8] sm:$0xff]  ;;  %v819_v60 = vld [vmem:[#allocation7 + $0x5c0] sm:$0xff] }
  0x84   : > { %508 = vmatpush1.msra.mxu0 %v415_v40  ;;  %579 = vmatpush1.msra.mxu1 %v417_v41  ;;  %v816_v61 = vld [vmem:[#allocation7 + $0x5a8] sm:$0xff]  ;;  %v815_v63 = vld [vmem:[#allocation7 + $0x5a0] sm:$0xff] }
  0x85   : > { %509 = vmatprep.subr.mxu0 %v412_v42  ;;  %580 = vmatprep.subr.mxu1 %v414_v43  ;;  %v684_v62 = vld [vmem:[#allocation7 + $0x188] sm:$0xff]  ;;  %v683_v0 = vld [vmem:[#allocation7 + $0x180] sm:$0xff] }
  0x86   : > { %510 = vmatpush1.msra.mxu0 %v411_v44  ;;  %581 = vmatpush1.msra.mxu1 %v413_v45  ;;  %v812_v1 = vld [vmem:[#allocation7 + $0x588] sm:$0xff]  ;;  %v811_v3 = vld [vmem:[#allocation7 + $0x580] sm:$0xff] }
  0x87   : > { %511 = vmatprep.subr.mxu0 %v408_v46  ;;  %582 = vmatprep.subr.mxu1 %v410_v47  ;;  %v680_v2 = vld [vmem:[#allocation7 + $0x168] sm:$0xff]  ;;  %v679_v4 = vld [vmem:[#allocation7 + $0x160] sm:$0xff] }
  0x88   : > { %512 = vmatpush1.msra.mxu0 %v407_v48  ;;  %583 = vmatpush1.msra.mxu1 %v409_v49  ;;  %v808_v5 = vld [vmem:[#allocation7 + $0x568] sm:$0xff]  ;;  %v807_v7 = vld [vmem:[#allocation7 + $0x560] sm:$0xff] }
  0x89   : > { %1845 = vmatmul.mubr.msk.f32.vlgmr.msra.gmra.mxu0 %vm477_vm0, %v406_v50  ;;  %1846 = vmatmul.mubr.msk.f32.vlgmr.msra.gmra.mxu1 %vm477_vm0, %v406_v50  ;;  %v676_v6 = vld [vmem:[#allocation7 + $0x148] sm:$0xff]  ;;  %v675_v8 = vld [vmem:[#allocation7 + $0x140] sm:$0xff] }
  0x8a   : > { %861 = vmatprep.subr.mxu0 %v696_v51  ;;  %932 = vmatprep.subr.mxu1 %v824_v55  ;;  %v804_v9 = vld [vmem:[#allocation7 + $0x548] sm:$0xff]  ;;  %v803_v11 = vld [vmem:[#allocation7 + $0x540] sm:$0xff] }
  0x8b   : > { %862 = vmatpush1.msra.mxu0 %v695_v52  ;;  %933 = vmatpush1.msra.mxu1 %v823_v56  ;;  %v672_v10 = vld [vmem:[#allocation7 + $0x128] sm:$0xff]  ;;  %v671_v12 = vld [vmem:[#allocation7 + $0x120] sm:$0xff] }
  0x8c   : > { %863 = vmatprep.subr.mxu0 %v692_v53  ;;  %934 = vmatprep.subr.mxu1 %v820_v58  ;;  %v800_v13 = vld [vmem:[#allocation7 + $0x528] sm:$0xff]  ;;  %v799_v15 = vld [vmem:[#allocation7 + $0x520] sm:$0xff] }
  0x8d   : > { %864 = vmatpush1.msra.mxu0 %v691_v54  ;;  %935 = vmatpush1.msra.mxu1 %v819_v60  ;;  %v668_v14 = vld [vmem:[#allocation7 + $0x108] sm:$0xff]  ;;  %v667_v16 = vld [vmem:[#allocation7 + $0x100] sm:$0xff] }
  0x8e   : > { %865 = vmatprep.subr.mxu0 %v688_v57  ;;  %936 = vmatprep.subr.mxu1 %v816_v61  ;;  %v796_v17 = vld [vmem:[#allocation7 + $0x508] sm:$0xff]  ;;  %v795_v19 = vld [vmem:[#allocation7 + $0x500] sm:$0xff] }
  0x8f   : > { %866 = vmatpush1.msra.mxu0 %v687_v59  ;;  %937 = vmatpush1.msra.mxu1 %v815_v63  ;;  %v664_v18 = vld [vmem:[#allocation7 + $0xe8] sm:$0xff]  ;;  %v663_v20 = vld [vmem:[#allocation7 + $0xe0] sm:$0xff] }
  0x90   : > { %867 = vmatprep.subr.mxu0 %v684_v62  ;;  %938 = vmatprep.subr.mxu1 %v812_v1  ;;  %v792_v21 = vld [vmem:[#allocation7 + $0x4e8] sm:$0xff]  ;;  %v791_v23 = vld [vmem:[#allocation7 + $0x4e0] sm:$0xff] }
  0x91   : > { %868 = vmatpush1.msra.mxu0 %v683_v0  ;;  %939 = vmatpush1.msra.mxu1 %v811_v3  ;;  %v660_v22 = vld [vmem:[#allocation7 + $0xc8] sm:$0xff]  ;;  %v659_v24 = vld [vmem:[#allocation7 + $0xc0] sm:$0xff] }
  0x92   : > { %869 = vmatprep.subr.mxu0 %v680_v2  ;;  %940 = vmatprep.subr.mxu1 %v808_v5  ;;  %v788_v25 = vld [vmem:[#allocation7 + $0x4c8] sm:$0xff]  ;;  %v787_v27 = vld [vmem:[#allocation7 + $0x4c0] sm:$0xff] }
  0x93   : > { %870 = vmatpush1.msra.mxu0 %v679_v4  ;;  %941 = vmatpush1.msra.mxu1 %v807_v7  ;;  %v656_v26 = vld [vmem:[#allocation7 + $0xa8] sm:$0xff]  ;;  %v655_v28 = vld [vmem:[#allocation7 + $0xa0] sm:$0xff] }
  0x94   : > { %871 = vmatprep.subr.mxu0 %v676_v6  ;;  %942 = vmatprep.subr.mxu1 %v804_v9  ;;  %v784_v29 = vld [vmem:[#allocation7 + $0x4a8] sm:$0xff]  ;;  %v783_v31 = vld [vmem:[#allocation7 + $0x4a0] sm:$0xff] }
  0x95   : > { %872 = vmatpush1.msra.mxu0 %v675_v8  ;;  %943 = vmatpush1.msra.mxu1 %v803_v11  ;;  %v652_v30 = vld [vmem:[#allocation7 + $0x88] sm:$0xff]  ;;  %v651_v32 = vld [vmem:[#allocation7 + $0x80] sm:$0xff] }
  0x96   : > { %873 = vmatprep.subr.mxu0 %v672_v10  ;;  %944 = vmatprep.subr.mxu1 %v800_v13  ;;  %v780_v33 = vld [vmem:[#allocation7 + $0x488] sm:$0xff]  ;;  %v779_v35 = vld [vmem:[#allocation7 + $0x480] sm:$0xff] }
  0x97   : > { %874 = vmatpush1.msra.mxu0 %v671_v12  ;;  %945 = vmatpush1.msra.mxu1 %v799_v15  ;;  %v648_v34 = vld [vmem:[#allocation7 + $0x68] sm:$0xff]  ;;  %v647_v36 = vld [vmem:[#allocation7 + $0x60] sm:$0xff] }
  0x98   : > { %875 = vmatprep.subr.mxu0 %v668_v14  ;;  %946 = vmatprep.subr.mxu1 %v796_v17  ;;  %v776_v37 = vld [vmem:[#allocation7 + $0x468] sm:$0xff]  ;;  %v775_v39 = vld [vmem:[#allocation7 + $0x460] sm:$0xff] }
  0x99   : > { %876 = vmatpush1.msra.mxu0 %v667_v16  ;;  %947 = vmatpush1.msra.mxu1 %v795_v19  ;;  %v644_v38 = vld [vmem:[#allocation7 + $0x48] sm:$0xff]  ;;  %v643_v40 = vld [vmem:[#allocation7 + $0x40] sm:$0xff] }
  0x9a   : > { %877 = vmatprep.subr.mxu0 %v664_v18  ;;  %948 = vmatprep.subr.mxu1 %v792_v21  ;;  %v772_v41 = vld [vmem:[#allocation7 + $0x448] sm:$0xff]  ;;  %v771_v43 = vld [vmem:[#allocation7 + $0x440] sm:$0xff] }
  0x9b   : > { %878 = vmatpush1.msra.mxu0 %v663_v20  ;;  %949 = vmatpush1.msra.mxu1 %v791_v23  ;;  %v640_v42 = vld [vmem:[#allocation7 + $0x28] sm:$0xff]  ;;  %v639_v44 = vld [vmem:[#allocation7 + $0x20] sm:$0xff]  ;;  %v698_v23 = vld [vmem:[#allocation7 + $0x1f8] sm:$0xff] }
  0x9c   : > { %879 = vmatprep.subr.mxu0 %v660_v22  ;;  %950 = vmatprep.subr.mxu1 %v788_v25  ;;  %v636_v45 = vld [vmem:[#allocation7 + $0x8] sm:$0xff]  ;;  %v635_v46 = vld [vmem:[#allocation7] sm:$0xff]  ;;  %v457_v25 = vlaneseq }
  0x9d   : > { %880 = vmatpush1.msra.mxu0 %v659_v24  ;;  %951 = vmatpush1.msra.mxu1 %v787_v27  ;;  %v760_v47 = vld [vmem:[#allocation7 + $0x3e8] sm:$0xff]  ;;  %v759_v48 = vld [vmem:[#allocation7 + $0x3e0] sm:$0xff]  ;;  %v826_v24 = vld [vmem:[#allocation7 + $0x5f8] sm:$0xff] }
  0x9e   : > { %881 = vmatprep.subr.mxu0 %v656_v26  ;;  %952 = vmatprep.subr.mxu1 %v784_v29  ;;  %v756_v49 = vld [vmem:[#allocation7 + $0x3c8] sm:$0xff]  ;;  %v755_v50 = vld [vmem:[#allocation7 + $0x3c0] sm:$0xff]  ;;  %v458_v26 = vshrl.u32 %v457_v25, 7  ;;  %v789_v25 = vld [vmem:[#allocation7 + $0x4d0] sm:$0xff] }
  0x9f   : > { %882 = vmatpush1.msra.mxu0 %v655_v28  ;;  %953 = vmatpush1.msra.mxu1 %v783_v31  ;;  %v752_v51 = vld [vmem:[#allocation7 + $0x3a8] sm:$0xff]  ;;  %v751_v52 = vld [vmem:[#allocation7 + $0x3a0] sm:$0xff] }
  0xa0   : > { %883 = vmatprep.subr.mxu0 %v652_v30  ;;  %954 = vmatprep.subr.mxu1 %v780_v33  ;;  %v748_v53 = vld [vmem:[#allocation7 + $0x388] sm:$0xff]  ;;  %v747_v54 = vld [vmem:[#allocation7 + $0x380] sm:$0xff]  ;;  %v2331_v27 = vsub.s32 0, %v458_v26  ;;  %v2333_v28 = vsub.s32 2, %v458_v26  ;;  %v2338_v30 = vsub.s32 1, %v458_v26  ;;  %v2340_v31 = vsub.s32 3, %v458_v26 }
  0xa1   : > { %884 = vmatpush1.msra.mxu0 %v651_v32  ;;  %955 = vmatpush1.msra.mxu1 %v779_v35  ;;  %v744_v55 = vld [vmem:[#allocation7 + $0x368] sm:$0xff]  ;;  %v743_v56 = vld [vmem:[#allocation7 + $0x360] sm:$0xff]  ;;  %v658_v26 = vld [vmem:[#allocation7 + $0xb8] sm:$0xff] }
  0xa2   : > { %885 = vmatprep.subr.mxu0 %v648_v34  ;;  %956 = vmatprep.subr.mxu1 %v776_v37  ;;  %v740_v57 = vld [vmem:[#allocation7 + $0x348] sm:$0xff]  ;;  %v739_v58 = vld [vmem:[#allocation7 + $0x340] sm:$0xff] }
  0xa3   : > { %886 = vmatpush1.msra.mxu0 %v647_v36  ;;  %957 = vmatpush1.msra.mxu1 %v775_v39  ;;  %v736_v59 = vld [vmem:[#allocation7 + $0x328] sm:$0xff]  ;;  %v735_v60 = vld [vmem:[#allocation7 + $0x320] sm:$0xff] }
  0xa4   : > { %887 = vmatprep.subr.mxu0 %v644_v38  ;;  %958 = vmatprep.subr.mxu1 %v772_v41  ;;  %v732_v61 = vld [vmem:[#allocation7 + $0x308] sm:$0xff]  ;;  %v731_v62 = vld [vmem:[#allocation7 + $0x300] sm:$0xff] }
  0xa5   : > { %888 = vmatpush1.msra.mxu0 %v643_v40  ;;  %959 = vmatpush1.msra.mxu1 %v771_v43  ;;  %v728_v63 = vld [vmem:[#allocation7 + $0x2e8] sm:$0xff]  ;;  %v727_v0 = vld [vmem:[#allocation7 + $0x2e0] sm:$0xff] }
  0xa6   : > { %889 = vmatprep.subr.mxu0 %v640_v42  ;;  %v724_v1 = vld [vmem:[#allocation7 + $0x2c8] sm:$0xff]  ;;  %v723_v2 = vld [vmem:[#allocation7 + $0x2c0] sm:$0xff] }
  0xa7   : > { %890 = vmatpush1.msra.mxu0 %v639_v44  ;;  %v720_v3 = vld [vmem:[#allocation7 + $0x2a8] sm:$0xff]  ;;  %v719_v4 = vld [vmem:[#allocation7 + $0x2a0] sm:$0xff] }
  0xa8   : > { %891 = vmatprep.subr.mxu0 %v636_v45  ;;  %v716_v5 = vld [vmem:[#allocation7 + $0x288] sm:$0xff]  ;;  %v715_v6 = vld [vmem:[#allocation7 + $0x280] sm:$0xff] }
  0xa9   : > { %892 = vmatpush1.msra.mxu0 %v635_v46  ;;  %v712_v7 = vld [vmem:[#allocation7 + $0x268] sm:$0xff]  ;;  %v711_v9 = vld [vmem:[#allocation7 + $0x260] sm:$0xff] }
  0xaa   : > { %893 = vmatprep.subr.mxu0 %v760_v47  ;;  %v768_v8 = vld [vmem:[#allocation7 + $0x428] sm:$0xff]  ;;  %v767_v10 = vld [vmem:[#allocation7 + $0x420] sm:$0xff] }
  0xab   : > { %894 = vmatpush2.msra.mxu0 %v759_v48  ;;  %960 = vmatprep.subr.mxu1 %v768_v8  ;;  %v708_v11 = vld [vmem:[#allocation7 + $0x248] sm:$0xff]  ;;  %v707_v13 = vld [vmem:[#allocation7 + $0x240] sm:$0xff]  ;;  %v677_v8 = vld [vmem:[#allocation7 + $0x150] sm:$0xff] }
  0xac   : > { %895 = vmatprep.subr.mxu0 %v756_v49  ;;  %961 = vmatpush1.msra.mxu1 %v767_v10  ;;  %v764_v12 = vld [vmem:[#allocation7 + $0x408] sm:$0xff]  ;;  %v763_v14 = vld [vmem:[#allocation7 + $0x400] sm:$0xff]  ;;  %v674_v10 = vld [vmem:[#allocation7 + $0x138] sm:$0xff] }
  0xad   : > { %896 = vmatpush2.msra.mxu0 %v755_v50  ;;  %962 = vmatprep.subr.mxu1 %v764_v12  ;;  %v704_v15 = vld [vmem:[#allocation7 + $0x228] sm:$0xff]  ;;  %v703_v17 = vld [vmem:[#allocation7 + $0x220] sm:$0xff]  ;;  %v673_v12 = vld [vmem:[#allocation7 + $0x130] sm:$0xff] }
  0xae   : > { %897 = vmatprep.subr.mxu0 %v752_v51  ;;  %963 = vmatpush1.msra.mxu1 %v763_v14  ;;  %v832_v16 = vld [vmem:[#allocation7 + $0x628] sm:$0xff]  ;;  %v831_v18 = vld [vmem:[#allocation7 + $0x620] sm:$0xff]  ;;  %v697_v51 = vld [vmem:[#allocation7 + $0x1f0] sm:$0xff] }
  0xaf   : > { %898 = vmatpush2.msra.mxu0 %v751_v52  ;;  %992 = vmatprep.subr.mxu1 %v832_v16  ;;  %v700_v19 = vld [vmem:[#allocation7 + $0x208] sm:$0xff]  ;;  %v699_v21 = vld [vmem:[#allocation7 + $0x200] sm:$0xff]  ;;  %v825_v52 = vld [vmem:[#allocation7 + $0x5f0] sm:$0xff] }
  0xb0   : > { %899 = vmatprep.subr.mxu0 %v748_v53  ;;  %993 = vmatpush2.msra.mxu1 %v831_v18  ;;  %v828_v20 = vld [vmem:[#allocation7 + $0x608] sm:$0xff]  ;;  %v827_v22 = vld [vmem:[#allocation7 + $0x600] sm:$0xff]  ;;  %v670_v14 = vld [vmem:[#allocation7 + $0x118] sm:$0xff] }
  0xb1   : > { %900 = vmatpush2.msra.mxu0 %v747_v54  ;;  %994 = vmatprep.subr.mxu1 %v828_v20  ;;  %v455_v29 = vld [vmem:[%s2415_s2] sm:$0xf]  ;;  %v694_v54 = vld [vmem:[#allocation7 + $0x1d8] sm:$0xff] }
  0xb2   : > { %901 = vmatprep.subr.mxu0 %v744_v55  ;;  %995 = vmatpush2.msra.mxu1 %v827_v22  ;;  %v460_v32 = vrot.slane %v455_v29, %v2331_v27  ;;  %v468_v33 = vrot.slane %v455_v29, %v2333_v28  ;;  %v464_v36 = vrot.slane %v455_v29, %v2338_v30  ;;  %v822_v55 = vld [vmem:[#allocation7 + $0x5d8] sm:$0xff]  ;;  %v669_v16 = vld [vmem:[#allocation7 + $0x110] sm:$0xff] }
  0xb3   : > { %902 = vmatpush2.msra.mxu0 %v743_v56  ;;  %1003 = vmatprep.subr.mxu1 %v698_v23  ;;  %v472_v37 = vrot.slane %v455_v29, %v2340_v31  ;;  %v693_v56 = vld [vmem:[#allocation7 + $0x1d0] sm:$0xff]  ;;  %v666_v18 = vld [vmem:[#allocation7 + $0xf8] sm:$0xff] }
  0xb4   : > { %903 = vmatprep.subr.mxu0 %v740_v57  ;;  %v821_v57 = vld [vmem:[#allocation7 + $0x5d0] sm:$0xff]  ;;  %v662_v22 = vld [vmem:[#allocation7 + $0xd8] sm:$0xff] }
  0xb5   : > { %904 = vmatpush2.msra.mxu0 %v739_v58  ;;  %v690_v58 = vld [vmem:[#allocation7 + $0x1b8] sm:$0xff]  ;;  %v665_v20 = vld [vmem:[#allocation7 + $0xf0] sm:$0xff] }
  0xb6   : > { %905 = vmatprep.subr.mxu0 %v736_v59  ;;  %v818_v59 = vld [vmem:[#allocation7 + $0x5b8] sm:$0xff] }
  0xb7   : > { %906 = vmatpush2.msra.mxu0 %v735_v60  ;;  %v689_v60 = vld [vmem:[#allocation7 + $0x1b0] sm:$0xff]  ;;  %v790_v23 = vld [vmem:[#allocation7 + $0x4d8] sm:$0xff] }
  0xb8   : > { %907 = vmatprep.subr.mxu0 %v732_v61  ;;  %v817_v61 = vld [vmem:[#allocation7 + $0x5b0] sm:$0xff]  ;;  %v786_v29 = vld [vmem:[#allocation7 + $0x4b8] sm:$0xff] }
  0xb9   : > { %908 = vmatpush2.msra.mxu0 %v731_v62  ;;  %v686_v62 = vld [vmem:[#allocation7 + $0x198] sm:$0xff] }
  0xba   : > { %909 = vmatprep.subr.mxu0 %v728_v63  ;;  %v814_v63 = vld [vmem:[#allocation7 + $0x598] sm:$0xff] }
  0xbb   : > { %910 = vmatpush2.msra.mxu0 %v727_v0  ;;  %v685_v0 = vld [vmem:[#allocation7 + $0x190] sm:$0xff] }
  0xbc   : > { %911 = vmatprep.subr.mxu0 %v724_v1  ;;  %v813_v1 = vld [vmem:[#allocation7 + $0x590] sm:$0xff] }
  0xbd   : > { %912 = vmatpush2.msra.mxu0 %v723_v2  ;;  %v682_v2 = vld [vmem:[#allocation7 + $0x178] sm:$0xff] }
  0xbe   : > { %913 = vmatprep.subr.mxu0 %v720_v3  ;;  %v810_v3 = vld [vmem:[#allocation7 + $0x578] sm:$0xff] }
  0xbf   : > { %914 = vmatpush2.msra.mxu0 %v719_v4  ;;  %v681_v4 = vld [vmem:[#allocation7 + $0x170] sm:$0xff] }
  0xc0   : > { %915 = vmatprep.subr.mxu0 %v716_v5  ;;  %v809_v5 = vld [vmem:[#allocation7 + $0x570] sm:$0xff] }
  0xc1   : > { %916 = vmatpush2.msra.mxu0 %v715_v6  ;;  %v678_v6 = vld [vmem:[#allocation7 + $0x158] sm:$0xff] }
  0xc2   : > { %917 = vmatprep.subr.mxu0 %v712_v7  ;;  %v806_v7 = vld [vmem:[#allocation7 + $0x558] sm:$0xff] }
  0xc3   : > { %918 = vmatpush2.msra.mxu0 %v711_v9  ;;  %v805_v9 = vld [vmem:[#allocation7 + $0x550] sm:$0xff] }
  0xc4   : > { %919 = vmatprep.subr.mxu0 %v708_v11  ;;  %v802_v11 = vld [vmem:[#allocation7 + $0x538] sm:$0xff] }
  0xc5   : > { %920 = vmatpush2.msra.mxu0 %v707_v13  ;;  %v801_v13 = vld [vmem:[#allocation7 + $0x530] sm:$0xff] }
  0xc6   : > { %921 = vmatprep.subr.mxu0 %v704_v15  ;;  %v798_v15 = vld [vmem:[#allocation7 + $0x518] sm:$0xff] }
  0xc7   : > { %922 = vmatpush2.msra.mxu0 %v703_v17  ;;  %v797_v17 = vld [vmem:[#allocation7 + $0x510] sm:$0xff] }
  0xc8   : > { %923 = vmatprep.subr.mxu0 %v700_v19  ;;  %v794_v19 = vld [vmem:[#allocation7 + $0x4f8] sm:$0xff] }
  0xc9   : > { %924 = vmatpush2.msra.mxu0 %v699_v21  ;;  %v793_v21 = vld [vmem:[#allocation7 + $0x4f0] sm:$0xff] }
  0xca   : > { %1074 = vmatprep.subr.mxu0 %v826_v24  ;;  %v661_v24 = vld [vmem:[#allocation7 + $0xd0] sm:$0xff] }
 0x149   : > { %v547_v34 = vpop.f32.mrf.mxu0  ;;  %v618_v35 = vpop.f32.mrf.mxu1 }
 0x14a   : > { %v548_v38 = vadd.f32 %v547_v34, %v460_v32  ;;  %v619_v39 = vadd.f32 %v618_v35, %v468_v33  ;;  %v657_v32 = vld [vmem:[#allocation7 + $0xb0] sm:$0xff]  ;;  %v654_v34 = vld [vmem:[#allocation7 + $0x98] sm:$0xff] }
 0x14b   : > { %v549_v40 = vpop.f32.mrf.mxu0  ;;  %v620_v41 = vpop.f32.mrf.mxu1  ;;  %v785_v33 = vld [vmem:[#allocation7 + $0x4b0] sm:$0xff]  ;;  %v782_v35 = vld [vmem:[#allocation7 + $0x498] sm:$0xff] }
 0x14c   : > { %v627_v42 = vmul.f32 0.01, %v548_v38  ;;  %vm623_vm1 = vcmp.gt.f32.partialorder %v548_v38, 0.0  ;;  %v550_v43 = vadd.f32 %v549_v40, %v464_v36  ;;  %v621_v44 = vadd.f32 %v620_v41, %v472_v37  ;;  %v653_v36 = vld [vmem:[#allocation7 + $0x90] sm:$0xff] }
 0x14d   : > { %vm625_vm2 = vcmp.gt.f32.partialorder %v619_v39, 0.0  ;;  %v629_v45 = vmul.f32 0.01, %v619_v39  ;;  %v781_v37 = vld [vmem:[#allocation7 + $0x490] sm:$0xff] }
 0x14e   : > { %v628_v46 = vmul.f32 0.01, %v550_v43  ;;  %vm626_vm4 = vcmp.gt.f32.partialorder %v621_v44, 0.0  ;;  %v630_v47 = vmul.f32 0.01, %v621_v44  ;;  %vm624_vm5 = vcmp.gt.f32.partialorder %v550_v43, 0.0 }
 0x14f   : > { %v2346_v48 = vsel %vm623_vm1, %v548_v38, %v627_v42  ;;  %v2352_v53 = vsel %vm625_vm2, %v619_v39, %v629_v45  ;;  %v650_v38 = vld [vmem:[#allocation7 + $0x78] sm:$0xff]  ;;  %v649_v40 = vld [vmem:[#allocation7 + $0x70] sm:$0xff] }
 0x150   : > { %v2348_v49 = vsel %vm624_vm5, %v550_v43, %v628_v46  ;;  %v634_v50 = vsel %vm626_vm4, %v621_v44, %v630_v47  ;;  %v778_v39 = vld [vmem:[#allocation7 + $0x478] sm:$0xff]  ;;  %v777_v41 = vld [vmem:[#allocation7 + $0x470] sm:$0xff] }
 0x151   : > { %925 = vmatprep.mubr.f32.mxu0 %v2348_v49  ;;  %1847 = vmatprep.mubr.msk.f32.mxu1 %vm857_vm3, %v634_v50  ;;  %v646_v42 = vld [vmem:[#allocation7 + $0x58] sm:$0xff]  ;;  %v645_v44 = vld [vmem:[#allocation7 + $0x50] sm:$0xff] }
 0x152   : > { %926 = vmatmul.mubr.f32.vlgmr.msra.gmra.mxu0 %v2346_v48  ;;  %997 = vmatmul.mubr.f32.vlgmr.msra.gmra.mxu1 %v2352_v53  ;;  %v774_v43 = vld [vmem:[#allocation7 + $0x458] sm:$0xff]  ;;  %v773_v45 = vld [vmem:[#allocation7 + $0x450] sm:$0xff] }
 0x153   : > { %1004 = vmatpush1.msra.mxu1 %v697_v51  ;;  %1075 = vmatpush1.msra.mxu0 %v825_v52  ;;  %v642_v46 = vld [vmem:[#allocation7 + $0x38] sm:$0xff]  ;;  %v769_v51 = vld [vmem:[#allocation7 + $0x430] sm:$0xff] }
 0x154   : > { %1005 = vmatprep.subr.mxu1 %v694_v54  ;;  %1076 = vmatprep.subr.mxu0 %v822_v55  ;;  %v770_v47 = vld [vmem:[#allocation7 + $0x438] sm:$0xff]  ;;  %v637_v55 = vld [vmem:[#allocation7 + $0x10] sm:$0xff] }
 0x155   : > { %1848 = vmatprep.mubr.msk.f32.mxu0 %vm857_vm3, %v634_v50  ;;  %1006 = vmatpush1.msra.mxu1 %v693_v56  ;;  %v641_v50 = vld [vmem:[#allocation7 + $0x30] sm:$0xff]  ;;  %v638_v52 = vld [vmem:[#allocation7 + $0x18] sm:$0xff] }
 0x156   : > { %1077 = vmatpush1.msra.mxu0 %v821_v57  ;;  %1007 = vmatprep.subr.mxu1 %v690_v58  ;;  %v766_v54 = vld [vmem:[#allocation7 + $0x418] sm:$0xff]  ;;  %v765_v56 = vld [vmem:[#allocation7 + $0x410] sm:$0xff] }
 0x157   : > { %1078 = vmatprep.subr.mxu0 %v818_v59  ;;  %1008 = vmatpush1.msra.mxu1 %v689_v60  ;;  %v762_v57 = vld [vmem:[#allocation7 + $0x3f8] sm:$0xff]  ;;  %v761_v59 = vld [vmem:[#allocation7 + $0x3f0] sm:$0xff] }
 0x158   : > { %1079 = vmatpush1.msra.mxu0 %v817_v61  ;;  %1009 = vmatprep.subr.mxu1 %v686_v62  ;;  %v834_v58 = vld [vmem:[#allocation7 + $0x638] sm:$0xff]  ;;  %v833_v60 = vld [vmem:[#allocation7 + $0x630] sm:$0xff] }
 0x159   : > { %1080 = vmatprep.subr.mxu0 %v814_v63  ;;  %1010 = vmatpush1.msra.mxu1 %v685_v0  ;;  %v830_v61 = vld [vmem:[#allocation7 + $0x618] sm:$0xff]  ;;  %v757_v62 = vld [vmem:[#allocation7 + $0x3d0] sm:$0xff] }
 0x15a   : > { %1081 = vmatpush1.msra.mxu0 %v813_v1  ;;  %1011 = vmatprep.subr.mxu1 %v682_v2  ;;  %v829_v63 = vld [vmem:[#allocation7 + $0x610] sm:$0xff]  ;;  %v754_v0 = vld [vmem:[#allocation7 + $0x3b8] sm:$0xff]  ;;  %v1218_v2 = vld [vmem:[#allocation8 + $0x1e8] sm:$0xff] }
 0x15b   : > { %1082 = vmatprep.subr.mxu0 %v810_v3  ;;  %1012 = vmatpush1.msra.mxu1 %v681_v4  ;;  %v753_v1 = vld [vmem:[#allocation7 + $0x3b0] sm:$0xff]  ;;  %v750_v3 = vld [vmem:[#allocation7 + $0x398] sm:$0xff]  ;;  %v1217_v4 = vld [vmem:[#allocation8 + $0x1e0] sm:$0xff] }
 0x15c   : > { %1083 = vmatpush1.msra.mxu0 %v809_v5  ;;  %1013 = vmatprep.subr.mxu1 %v678_v6  ;;  %v749_v5 = vld [vmem:[#allocation7 + $0x390] sm:$0xff]  ;;  %v1214_v6 = vld [vmem:[#allocation8 + $0x1c8] sm:$0xff] }
 0x15d   : > { %1084 = vmatprep.subr.mxu0 %v806_v7  ;;  %1014 = vmatpush1.msra.mxu1 %v677_v8  ;;  %v746_v7 = vld [vmem:[#allocation7 + $0x378] sm:$0xff]  ;;  %v1213_v8 = vld [vmem:[#allocation8 + $0x1c0] sm:$0xff] }
 0x15e   : > { %1085 = vmatpush1.msra.mxu0 %v805_v9  ;;  %1015 = vmatprep.subr.mxu1 %v674_v10  ;;  %v745_v9 = vld [vmem:[#allocation7 + $0x370] sm:$0xff]  ;;  %v1210_v10 = vld [vmem:[#allocation8 + $0x1a8] sm:$0xff] }
 0x15f   : > { %1086 = vmatprep.subr.mxu0 %v802_v11  ;;  %1016 = vmatpush1.msra.mxu1 %v673_v12  ;;  %v742_v11 = vld [vmem:[#allocation7 + $0x358] sm:$0xff]  ;;  %v1209_v12 = vld [vmem:[#allocation8 + $0x1a0] sm:$0xff] }
 0x160   : > { %1087 = vmatpush1.msra.mxu0 %v801_v13  ;;  %1017 = vmatprep.subr.mxu1 %v670_v14  ;;  %v741_v13 = vld [vmem:[#allocation7 + $0x350] sm:$0xff]  ;;  %v1206_v14 = vld [vmem:[#allocation8 + $0x188] sm:$0xff] }
 0x161   : > { %1088 = vmatprep.subr.mxu0 %v798_v15  ;;  %1018 = vmatpush1.msra.mxu1 %v669_v16  ;;  %v1205_v15 = vld [vmem:[#allocation8 + $0x180] sm:$0xff]  ;;  %v737_v16 = vld [vmem:[#allocation7 + $0x330] sm:$0xff] }
 0x162   : > { %1089 = vmatpush1.msra.mxu0 %v797_v17  ;;  %1019 = vmatprep.subr.mxu1 %v666_v18  ;;  %v1202_v17 = vld [vmem:[#allocation8 + $0x168] sm:$0xff]  ;;  %v734_v18 = vld [vmem:[#allocation7 + $0x318] sm:$0xff] }
 0x163   : > { %1090 = vmatprep.subr.mxu0 %v794_v19  ;;  %1020 = vmatpush1.msra.mxu1 %v665_v20  ;;  %v1201_v19 = vld [vmem:[#allocation8 + $0x160] sm:$0xff]  ;;  %v733_v20 = vld [vmem:[#allocation7 + $0x310] sm:$0xff] }
 0x164   : > { %1091 = vmatpush1.msra.mxu0 %v793_v21  ;;  %1021 = vmatprep.subr.mxu1 %v662_v22  ;;  %v1198_v21 = vld [vmem:[#allocation8 + $0x148] sm:$0xff]  ;;  %v730_v22 = vld [vmem:[#allocation7 + $0x2f8] sm:$0xff] }
 0x165   : > { %1092 = vmatprep.subr.mxu0 %v790_v23  ;;  %1022 = vmatpush1.msra.mxu1 %v661_v24  ;;  %v1197_v23 = vld [vmem:[#allocation8 + $0x140] sm:$0xff]  ;;  %v729_v24 = vld [vmem:[#allocation7 + $0x2f0] sm:$0xff] }
 0x166   : > { %1093 = vmatpush1.msra.mxu0 %v789_v25  ;;  %1023 = vmatprep.subr.mxu1 %v658_v26  ;;  %v1194_v25 = vld [vmem:[#allocation8 + $0x128] sm:$0xff]  ;;  %v726_v26 = vld [vmem:[#allocation7 + $0x2d8] sm:$0xff] }
 0x167   : > { %1094 = vmatprep.subr.mxu0 %v786_v29  ;;  %1024 = vmatpush1.msra.mxu1 %v657_v32  ;;  %v1193_v29 = vld [vmem:[#allocation8 + $0x120] sm:$0xff]  ;;  %v725_v32 = vld [vmem:[#allocation7 + $0x2d0] sm:$0xff] }
 0x168   : > { %1095 = vmatpush1.msra.mxu0 %v785_v33  ;;  %1025 = vmatprep.subr.mxu1 %v654_v34  ;;  %v1190_v33 = vld [vmem:[#allocation8 + $0x108] sm:$0xff]  ;;  %v722_v34 = vld [vmem:[#allocation7 + $0x2b8] sm:$0xff] }
 0x169   : > { %1096 = vmatprep.subr.mxu0 %v782_v35  ;;  %1026 = vmatpush1.msra.mxu1 %v653_v36  ;;  %v1189_v35 = vld [vmem:[#allocation8 + $0x100] sm:$0xff]  ;;  %v721_v36 = vld [vmem:[#allocation7 + $0x2b0] sm:$0xff] }
 0x16a   : > { %1097 = vmatpush1.msra.mxu0 %v781_v37  ;;  %1027 = vmatprep.subr.mxu1 %v650_v38  ;;  %v1186_v37 = vld [vmem:[#allocation8 + $0xe8] sm:$0xff]  ;;  %v718_v38 = vld [vmem:[#allocation7 + $0x298] sm:$0xff] }
 0x16b   : > { %1098 = vmatprep.subr.mxu0 %v778_v39  ;;  %1028 = vmatpush1.msra.mxu1 %v649_v40  ;;  %v1185_v39 = vld [vmem:[#allocation8 + $0xe0] sm:$0xff]  ;;  %v717_v40 = vld [vmem:[#allocation7 + $0x290] sm:$0xff] }
 0x16c   : > { %1099 = vmatpush1.msra.mxu0 %v777_v41  ;;  %1029 = vmatprep.subr.mxu1 %v646_v42  ;;  %v1182_v41 = vld [vmem:[#allocation8 + $0xc8] sm:$0xff]  ;;  %v714_v42 = vld [vmem:[#allocation7 + $0x278] sm:$0xff] }
 0x16d   : > { %1067 = vmatprep.mubr.f32.mxu1 %v2348_v49  ;;  %1100 = vmatprep.subr.mxu0 %v774_v43  ;;  %v758_v49 = vld [vmem:[#allocation7 + $0x3d8] sm:$0xff]  ;;  %v1181_v43 = vld [vmem:[#allocation8 + $0xc0] sm:$0xff] }
 0x16e   : > { %1030 = vmatpush1.msra.mxu1 %v645_v44  ;;  %1101 = vmatpush1.msra.mxu0 %v773_v45  ;;  %v713_v44 = vld [vmem:[#allocation7 + $0x270] sm:$0xff]  ;;  %v1178_v45 = vld [vmem:[#allocation8 + $0xa8] sm:$0xff] }
 0x16f   : > { %1031 = vmatprep.subr.mxu1 %v642_v46  ;;  %1102 = vmatprep.subr.mxu0 %v770_v47  ;;  %v710_v46 = vld [vmem:[#allocation7 + $0x258] sm:$0xff]  ;;  %v1177_v47 = vld [vmem:[#allocation8 + $0xa0] sm:$0xff] }
 0x170   : > { %1032 = vmatpush1.msra.mxu1 %v641_v50  ;;  %1103 = vmatpush1.msra.mxu0 %v769_v51  ;;  %v709_v50 = vld [vmem:[#allocation7 + $0x250] sm:$0xff]  ;;  %v1174_v51 = vld [vmem:[#allocation8 + $0x88] sm:$0xff] }
 0x171   : > { %1033 = vmatprep.subr.mxu1 %v638_v52  ;;  %1104 = vmatprep.subr.mxu0 %v766_v54  ;;  %v706_v52 = vld [vmem:[#allocation7 + $0x238] sm:$0xff]  ;;  %v1173_v54 = vld [vmem:[#allocation8 + $0x80] sm:$0xff] }
 0x172   : > { %1034 = vmatpush1.msra.mxu1 %v637_v55  ;;  %1105 = vmatpush1.msra.mxu0 %v765_v56  ;;  %v705_v55 = vld [vmem:[#allocation7 + $0x230] sm:$0xff]  ;;  %v1170_v56 = vld [vmem:[#allocation8 + $0x68] sm:$0xff] }
 0x173   : > { %1035 = vmatprep.subr.mxu1 %v762_v57  ;;  %1134 = vmatprep.subr.mxu0 %v834_v58  ;;  %v702_v57 = vld [vmem:[#allocation7 + $0x218] sm:$0xff]  ;;  %v1169_v58 = vld [vmem:[#allocation8 + $0x60] sm:$0xff] }
 0x174   : > { %1036 = vmatpush2.msra.mxu1 %v761_v59  ;;  %1135 = vmatpush2.msra.mxu0 %v833_v60  ;;  %v701_v59 = vld [vmem:[#allocation7 + $0x210] sm:$0xff]  ;;  %v1166_v60 = vld [vmem:[#allocation8 + $0x48] sm:$0xff] }
 0x175   : > { %1037 = vmatprep.subr.mxu1 %v758_v49  ;;  %1136 = vmatprep.subr.mxu0 %v830_v61  ;;  %v1165_v49 = vld [vmem:[#allocation8 + $0x40] sm:$0xff]  ;;  %v1162_v61 = vld [vmem:[#allocation8 + $0x28] sm:$0xff] }
 0x176   : > { %1038 = vmatpush2.msra.mxu1 %v757_v62  ;;  %1137 = vmatpush2.msra.mxu0 %v829_v63  ;;  %v1161_v62 = vld [vmem:[#allocation8 + $0x20] sm:$0xff]  ;;  %v1158_v63 = vld [vmem:[#allocation8 + $0x8] sm:$0xff] }
 0x177   : > { %1039 = vmatprep.subr.mxu1 %v754_v0  ;;  %1139 = vmatmul.mubr.f32.vlgmr.msra.gmra.mxu0 %v2352_v53  ;;  %v738_v53 = vld [vmem:[#allocation7 + $0x338] sm:$0xff]  ;;  %v1157_v0 = vld [vmem:[#allocation8] sm:$0xff] }
 0x178   : > { %1040 = vmatpush2.msra.mxu1 %v753_v1  ;;  %1382 = vmatprep.subr.mxu0 %v1218_v2  ;;  %v1282_v1 = vld [vmem:[#allocation8 + $0x3e8] sm:$0xff]  ;;  %v1281_v2 = vld [vmem:[#allocation8 + $0x3e0] sm:$0xff] }
 0x179   : > { %1041 = vmatprep.subr.mxu1 %v750_v3  ;;  %1383 = vmatpush1.msra.mxu0 %v1217_v4  ;;  %v1278_v3 = vld [vmem:[#allocation8 + $0x3c8] sm:$0xff]  ;;  %v1277_v4 = vld [vmem:[#allocation8 + $0x3c0] sm:$0xff] }
 0x17a   : > { %1042 = vmatpush2.msra.mxu1 %v749_v5  ;;  %1384 = vmatprep.subr.mxu0 %v1214_v6  ;;  %v1274_v5 = vld [vmem:[#allocation8 + $0x3a8] sm:$0xff]  ;;  %v1273_v6 = vld [vmem:[#allocation8 + $0x3a0] sm:$0xff] }
 0x17b   : > { %1043 = vmatprep.subr.mxu1 %v746_v7  ;;  %1385 = vmatpush1.msra.mxu0 %v1213_v8  ;;  %v1270_v7 = vld [vmem:[#allocation8 + $0x388] sm:$0xff] }
 0x17c   : > { %1044 = vmatpush2.msra.mxu1 %v745_v9  ;;  %1386 = vmatprep.subr.mxu0 %v1210_v10  ;;  %v1266_v8 = vld [vmem:[#allocation8 + $0x368] sm:$0xff]  ;;  %v1265_v9 = vld [vmem:[#allocation8 + $0x360] sm:$0xff] }
 0x17d   : > { %1045 = vmatprep.subr.mxu1 %v742_v11  ;;  %1387 = vmatpush1.msra.mxu0 %v1209_v12  ;;  %v1262_v10 = vld [vmem:[#allocation8 + $0x348] sm:$0xff]  ;;  %v1261_v11 = vld [vmem:[#allocation8 + $0x340] sm:$0xff] }
 0x17e   : > { %1046 = vmatpush2.msra.mxu1 %v741_v13  ;;  %1388 = vmatprep.subr.mxu0 %v1206_v14  ;;  %v1258_v12 = vld [vmem:[#allocation8 + $0x328] sm:$0xff]  ;;  %v1257_v13 = vld [vmem:[#allocation8 + $0x320] sm:$0xff] }
 0x17f   : > { %1047 = vmatprep.subr.mxu1 %v738_v53  ;;  %1389 = vmatpush1.msra.mxu0 %v1205_v15  ;;  %v1254_v14 = vld [vmem:[#allocation8 + $0x308] sm:$0xff]  ;;  %v1253_v53 = vld [vmem:[#allocation8 + $0x300] sm:$0xff] }
 0x180   : > { %1048 = vmatpush2.msra.mxu1 %v737_v16  ;;  %1390 = vmatprep.subr.mxu0 %v1202_v17  ;;  %v1250_v15 = vld [vmem:[#allocation8 + $0x2e8] sm:$0xff]  ;;  %v1249_v16 = vld [vmem:[#allocation8 + $0x2e0] sm:$0xff] }
 0x181   : > { %1049 = vmatprep.subr.mxu1 %v734_v18  ;;  %1391 = vmatpush1.msra.mxu0 %v1201_v19  ;;  %v1246_v17 = vld [vmem:[#allocation8 + $0x2c8] sm:$0xff]  ;;  %v1245_v18 = vld [vmem:[#allocation8 + $0x2c0] sm:$0xff] }
 0x182   : > { %1050 = vmatpush2.msra.mxu1 %v733_v20  ;;  %1392 = vmatprep.subr.mxu0 %v1198_v21  ;;  %v1242_v19 = vld [vmem:[#allocation8 + $0x2a8] sm:$0xff]  ;;  %v1241_v20 = vld [vmem:[#allocation8 + $0x2a0] sm:$0xff] }
 0x183   : > { %1051 = vmatprep.subr.mxu1 %v730_v22  ;;  %1393 = vmatpush1.msra.mxu0 %v1197_v23  ;;  %v1238_v21 = vld [vmem:[#allocation8 + $0x288] sm:$0xff]  ;;  %v1237_v22 = vld [vmem:[#allocation8 + $0x280] sm:$0xff] }
 0x184   : > { %1052 = vmatpush2.msra.mxu1 %v729_v24  ;;  %1394 = vmatprep.subr.mxu0 %v1194_v25  ;;  %v1234_v23 = vld [vmem:[#allocation8 + $0x268] sm:$0xff]  ;;  %v1233_v24 = vld [vmem:[#allocation8 + $0x260] sm:$0xff] }
 0x185   : > { %1053 = vmatprep.subr.mxu1 %v726_v26  ;;  %1395 = vmatpush1.msra.mxu0 %v1193_v29  ;;  %v1230_v25 = vld [vmem:[#allocation8 + $0x248] sm:$0xff]  ;;  %v1229_v26 = vld [vmem:[#allocation8 + $0x240] sm:$0xff] }
 0x186   : > { %1054 = vmatpush2.msra.mxu1 %v725_v32  ;;  %1396 = vmatprep.subr.mxu0 %v1190_v33  ;;  %v1226_v29 = vld [vmem:[#allocation8 + $0x228] sm:$0xff]  ;;  %v1225_v32 = vld [vmem:[#allocation8 + $0x220] sm:$0xff] }
 0x187   : > { %1055 = vmatprep.subr.mxu1 %v722_v34  ;;  %1397 = vmatpush1.msra.mxu0 %v1189_v35  ;;  %v1222_v33 = vld [vmem:[#allocation8 + $0x208] sm:$0xff]  ;;  %v1221_v34 = vld [vmem:[#allocation8 + $0x200] sm:$0xff] }
 0x188   : > { %1056 = vmatpush2.msra.mxu1 %v721_v36  ;;  %1398 = vmatprep.subr.mxu0 %v1186_v37  ;;  %v1346_v35 = vld [vmem:[#allocation8 + $0x5e8] sm:$0xff]  ;;  %v1345_v36 = vld [vmem:[#allocation8 + $0x5e0] sm:$0xff]  ;;  %v1348_v37 = vld [vmem:[#allocation8 + $0x5f8] sm:$0xff] }
 0x189   : > { %1057 = vmatprep.subr.mxu1 %v718_v38  ;;  %1399 = vmatpush1.msra.mxu0 %v1185_v39  ;;  %v1342_v38 = vld [vmem:[#allocation8 + $0x5c8] sm:$0xff]  ;;  %v1341_v39 = vld [vmem:[#allocation8 + $0x5c0] sm:$0xff] }
 0x18a   : > { %1058 = vmatpush2.msra.mxu1 %v717_v40  ;;  %1400 = vmatprep.subr.mxu0 %v1182_v41  ;;  %v1338_v40 = vld [vmem:[#allocation8 + $0x5a8] sm:$0xff]  ;;  %v1337_v41 = vld [vmem:[#allocation8 + $0x5a0] sm:$0xff] }
 0x18b   : > { %1059 = vmatprep.subr.mxu1 %v714_v42  ;;  %1401 = vmatpush1.msra.mxu0 %v1181_v43  ;;  %v1334_v42 = vld [vmem:[#allocation8 + $0x588] sm:$0xff]  ;;  %v1333_v43 = vld [vmem:[#allocation8 + $0x580] sm:$0xff] }
 0x18c   : > { %1060 = vmatpush2.msra.mxu1 %v713_v44  ;;  %1402 = vmatprep.subr.mxu0 %v1178_v45  ;;  %v1330_v44 = vld [vmem:[#allocation8 + $0x568] sm:$0xff]  ;;  %v1329_v45 = vld [vmem:[#allocation8 + $0x560] sm:$0xff] }
 0x18d   : > { %1061 = vmatprep.subr.mxu1 %v710_v46  ;;  %1403 = vmatpush1.msra.mxu0 %v1177_v47  ;;  %v1326_v46 = vld [vmem:[#allocation8 + $0x548] sm:$0xff]  ;;  %v1325_v47 = vld [vmem:[#allocation8 + $0x540] sm:$0xff] }
 0x18e   : > { %1062 = vmatpush2.msra.mxu1 %v709_v50  ;;  %1404 = vmatprep.subr.mxu0 %v1174_v51  ;;  %v1322_v50 = vld [vmem:[#allocation8 + $0x528] sm:$0xff]  ;;  %v1321_v51 = vld [vmem:[#allocation8 + $0x520] sm:$0xff] }
 0x18f   : > { %1063 = vmatprep.subr.mxu1 %v706_v52  ;;  %1405 = vmatpush1.msra.mxu0 %v1173_v54  ;;  %v1318_v52 = vld [vmem:[#allocation8 + $0x508] sm:$0xff]  ;;  %v1317_v54 = vld [vmem:[#allocation8 + $0x500] sm:$0xff] }
 0x190   : > { %1064 = vmatpush2.msra.mxu1 %v705_v55  ;;  %1406 = vmatprep.subr.mxu0 %v1170_v56  ;;  %v1314_v55 = vld [vmem:[#allocation8 + $0x4e8] sm:$0xff]  ;;  %v1313_v56 = vld [vmem:[#allocation8 + $0x4e0] sm:$0xff] }
 0x191   : > { %1065 = vmatprep.subr.mxu1 %v702_v57  ;;  %1407 = vmatpush1.msra.mxu0 %v1169_v58  ;;  %v1310_v57 = vld [vmem:[#allocation8 + $0x4c8] sm:$0xff]  ;;  %v1309_v58 = vld [vmem:[#allocation8 + $0x4c0] sm:$0xff] }
 0x192   : > { %1066 = vmatpush2.msra.mxu1 %v701_v59  ;;  %1408 = vmatprep.subr.mxu0 %v1166_v60  ;;  %v1306_v59 = vld [vmem:[#allocation8 + $0x4a8] sm:$0xff]  ;;  %v1305_v60 = vld [vmem:[#allocation8 + $0x4a0] sm:$0xff] }
 0x193   : > { %1068 = vmatmul.mubr.f32.vlgmr.msra.gmra.mxu1 %v2346_v48  ;;  %1409 = vmatpush1.msra.mxu0 %v1165_v49  ;;  %v1269_v48 = vld [vmem:[#allocation8 + $0x380] sm:$0xff]  ;;  %v1302_v49 = vld [vmem:[#allocation8 + $0x488] sm:$0xff] }
 0x194   : > { %1410 = vmatprep.subr.mxu0 %v1162_v61  ;;  %1453 = vmatprep.subr.mxu1 %v1346_v35  ;;  %v1301_v61 = vld [vmem:[#allocation8 + $0x480] sm:$0xff]  ;;  %v1332_v35 = vld [vmem:[#allocation8 + $0x578] sm:$0xff] }
 0x195   : > { %1411 = vmatpush1.msra.mxu0 %v1161_v62  ;;  %1454 = vmatpush1.msra.mxu1 %v1345_v36  ;;  %v1298_v62 = vld [vmem:[#allocation8 + $0x468] sm:$0xff]  ;;  %v1331_v36 = vld [vmem:[#allocation8 + $0x570] sm:$0xff] }
 0x196   : > { %1412 = vmatprep.subr.mxu0 %v1158_v63  ;;  %1455 = vmatprep.subr.mxu1 %v1342_v38  ;;  %v1297_v63 = vld [vmem:[#allocation8 + $0x460] sm:$0xff]  ;;  %v1327_v38 = vld [vmem:[#allocation8 + $0x550] sm:$0xff] }
 0x197   : > { %1413 = vmatpush1.msra.mxu0 %v1157_v0  ;;  %1456 = vmatpush1.msra.mxu1 %v1341_v39  ;;  %v1294_v0 = vld [vmem:[#allocation8 + $0x448] sm:$0xff]  ;;  %v1324_v39 = vld [vmem:[#allocation8 + $0x538] sm:$0xff] }
 0x198   : > { %1414 = vmatprep.subr.mxu0 %v1282_v1  ;;  %1457 = vmatprep.subr.mxu1 %v1338_v40  ;;  %v1293_v1 = vld [vmem:[#allocation8 + $0x440] sm:$0xff]  ;;  %v1323_v40 = vld [vmem:[#allocation8 + $0x530] sm:$0xff] }
 0x199   : > { %1415 = vmatpush2.msra.mxu0 %v1281_v2  ;;  %1458 = vmatpush1.msra.mxu1 %v1337_v41  ;;  %v1290_v2 = vld [vmem:[#allocation8 + $0x428] sm:$0xff]  ;;  %v1320_v41 = vld [vmem:[#allocation8 + $0x518] sm:$0xff] }
 0x19a   : > { %1416 = vmatprep.subr.mxu0 %v1278_v3  ;;  %1459 = vmatprep.subr.mxu1 %v1334_v42  ;;  %v1289_v3 = vld [vmem:[#allocation8 + $0x420] sm:$0xff]  ;;  %v1319_v42 = vld [vmem:[#allocation8 + $0x510] sm:$0xff] }
 0x19b   : > { %1417 = vmatpush2.msra.mxu0 %v1277_v4  ;;  %1460 = vmatpush1.msra.mxu1 %v1333_v43  ;;  %v1286_v4 = vld [vmem:[#allocation8 + $0x408] sm:$0xff]  ;;  %v1316_v43 = vld [vmem:[#allocation8 + $0x4f8] sm:$0xff] }
 0x19c   : > { %1418 = vmatprep.subr.mxu0 %v1274_v5  ;;  %1461 = vmatprep.subr.mxu1 %v1330_v44  ;;  %v1285_v5 = vld [vmem:[#allocation8 + $0x400] sm:$0xff]  ;;  %v1315_v44 = vld [vmem:[#allocation8 + $0x4f0] sm:$0xff] }
 0x19d   : > { %1419 = vmatpush2.msra.mxu0 %v1273_v6  ;;  %1462 = vmatpush1.msra.mxu1 %v1329_v45  ;;  %v1354_v6 = vld [vmem:[#allocation8 + $0x628] sm:$0xff]  ;;  %v1312_v45 = vld [vmem:[#allocation8 + $0x4d8] sm:$0xff] }
 0x19e   : > { %1420 = vmatprep.subr.mxu0 %v1270_v7  ;;  %1463 = vmatprep.subr.mxu1 %v1326_v46  ;;  %v1353_v7 = vld [vmem:[#allocation8 + $0x620] sm:$0xff]  ;;  %v1311_v46 = vld [vmem:[#allocation8 + $0x4d0] sm:$0xff] }
 0x19f   : > { %1421 = vmatpush2.msra.mxu0 %v1269_v48  ;;  %1464 = vmatpush1.msra.mxu1 %v1325_v47  ;;  %v1350_v48 = vld [vmem:[#allocation8 + $0x608] sm:$0xff]  ;;  %v1308_v47 = vld [vmem:[#allocation8 + $0x4b8] sm:$0xff] }
 0x1a0   : > { %1422 = vmatprep.subr.mxu0 %v1266_v8  ;;  %1465 = vmatprep.subr.mxu1 %v1322_v50  ;;  %v1349_v8 = vld [vmem:[#allocation8 + $0x600] sm:$0xff]  ;;  %v1307_v50 = vld [vmem:[#allocation8 + $0x4b0] sm:$0xff] }
 0x1a1   : > { %1423 = vmatpush2.msra.mxu0 %v1265_v9  ;;  %1466 = vmatpush1.msra.mxu1 %v1321_v51  ;;  %v1220_v9 = vld [vmem:[#allocation8 + $0x1f8] sm:$0xff] }
 0x1a2   : > { %1424 = vmatprep.subr.mxu0 %v1262_v10  ;;  %1467 = vmatprep.subr.mxu1 %v1318_v52  ;;  %v2363_v10 = vld [vmem:[%s2417_s4] sm:$0xf]  ;;  %v1304_v51 = vld [vmem:[#allocation8 + $0x498] sm:$0xff] }
 0x1a3   : > { %1425 = vmatpush2.msra.mxu0 %v1261_v11  ;;  %1468 = vmatpush1.msra.mxu1 %v1317_v54  ;;  %v840_v11 = vrot.slane %v2363_v10, %v2331_v27  ;;  %v1303_v52 = vld [vmem:[#allocation8 + $0x490] sm:$0xff]  ;;  %v1300_v54 = vld [vmem:[#allocation8 + $0x478] sm:$0xff] }
 0x1a4   : > { %1426 = vmatprep.subr.mxu0 %v1258_v12  ;;  %1469 = vmatprep.subr.mxu1 %v1314_v55  ;;  %v844_v12 = vrot.slane %v2363_v10, %v2338_v30  ;;  %v1299_v55 = vld [vmem:[#allocation8 + $0x470] sm:$0xff] }
 0x1a5   : > { %1427 = vmatpush2.msra.mxu0 %v1257_v13  ;;  %1470 = vmatpush1.msra.mxu1 %v1313_v56  ;;  %v1296_v56 = vld [vmem:[#allocation8 + $0x458] sm:$0xff] }
 0x1a6   : > { %1428 = vmatprep.subr.mxu0 %v1254_v14  ;;  %1471 = vmatprep.subr.mxu1 %v1310_v57  ;;  %v1295_v57 = vld [vmem:[#allocation8 + $0x450] sm:$0xff] }
 0x1a7   : > { %1429 = vmatpush2.msra.mxu0 %v1253_v53  ;;  %1472 = vmatpush1.msra.mxu1 %v1309_v58  ;;  %v1292_v58 = vld [vmem:[#allocation8 + $0x438] sm:$0xff] }
 0x1a8   : > { %1430 = vmatprep.subr.mxu0 %v1250_v15  ;;  %1473 = vmatprep.subr.mxu1 %v1306_v59  ;;  %v1291_v59 = vld [vmem:[#allocation8 + $0x430] sm:$0xff] }
 0x1a9   : > { %1431 = vmatpush2.msra.mxu0 %v1249_v16  ;;  %1474 = vmatpush1.msra.mxu1 %v1305_v60  ;;  %v1288_v60 = vld [vmem:[#allocation8 + $0x418] sm:$0xff] }
 0x1aa   : > { %1432 = vmatprep.subr.mxu0 %v1246_v17  ;;  %1475 = vmatprep.subr.mxu1 %v1302_v49  ;;  %v1287_v49 = vld [vmem:[#allocation8 + $0x410] sm:$0xff] }
 0x1ab   : > { %1433 = vmatpush2.msra.mxu0 %v1245_v18  ;;  %1476 = vmatpush1.msra.mxu1 %v1301_v61  ;;  %v1356_v61 = vld [vmem:[#allocation8 + $0x638] sm:$0xff] }
 0x1ac   : > { %1434 = vmatprep.subr.mxu0 %v1242_v19  ;;  %1477 = vmatprep.subr.mxu1 %v1298_v62  ;;  %v1355_v62 = vld [vmem:[#allocation8 + $0x630] sm:$0xff] }
 0x1ad   : > { %1435 = vmatpush2.msra.mxu0 %v1241_v20  ;;  %1478 = vmatpush1.msra.mxu1 %v1297_v63  ;;  %v1352_v63 = vld [vmem:[#allocation8 + $0x618] sm:$0xff] }
 0x1ae   : > { %1436 = vmatprep.subr.mxu0 %v1238_v21  ;;  %1479 = vmatprep.subr.mxu1 %v1294_v0  ;;  %v1351_v0 = vld [vmem:[#allocation8 + $0x610] sm:$0xff] }
 0x1af   : > { %1437 = vmatpush2.msra.mxu0 %v1237_v22  ;;  %1480 = vmatpush1.msra.mxu1 %v1293_v1  ;;  %v848_v1 = vrot.slane %v2363_v10, %v2333_v28 }
 0x1b0   : > { %1438 = vmatprep.subr.mxu0 %v1234_v23  ;;  %1481 = vmatprep.subr.mxu1 %v1290_v2  ;;  %v1347_v23 = vld [vmem:[#allocation8 + $0x5f0] sm:$0xff]  ;;  %v852_v2 = vrot.slane %v2363_v10, %v2340_v31  ;;  %v1216_v10 = vld [vmem:[#allocation8 + $0x1d8] sm:$0xff] }
 0x1b1   : > { %1439 = vmatpush2.msra.mxu0 %v1233_v24  ;;  %1482 = vmatpush1.msra.mxu1 %v1289_v3 }
 0x1b2   : > { %1440 = vmatprep.subr.mxu0 %v1230_v25  ;;  %1483 = vmatprep.subr.mxu1 %v1286_v4  ;;  %v1344_v25 = vld [vmem:[#allocation8 + $0x5d8] sm:$0xff] }
 0x1b3   : > { %1441 = vmatpush2.msra.mxu0 %v1229_v26  ;;  %1484 = vmatpush1.msra.mxu1 %v1285_v5  ;;  %v1343_v26 = vld [vmem:[#allocation8 + $0x5d0] sm:$0xff] }
 0x1b4   : > { %1442 = vmatprep.subr.mxu0 %v1226_v29  ;;  %1513 = vmatprep.subr.mxu1 %v1354_v6  ;;  %v1340_v29 = vld [vmem:[#allocation8 + $0x5b8] sm:$0xff] }
 0x1b5   : > { %1443 = vmatpush2.msra.mxu0 %v1225_v32  ;;  %1514 = vmatpush2.msra.mxu1 %v1353_v7  ;;  %v1339_v32 = vld [vmem:[#allocation8 + $0x5b0] sm:$0xff] }
 0x1b6   : > { %1444 = vmatprep.subr.mxu0 %v1222_v33  ;;  %1515 = vmatprep.subr.mxu1 %v1350_v48  ;;  %v1336_v33 = vld [vmem:[#allocation8 + $0x598] sm:$0xff] }
 0x1b7   : > { %1445 = vmatpush2.msra.mxu0 %v1221_v34  ;;  %1516 = vmatpush2.msra.mxu1 %v1349_v8  ;;  %v1335_v34 = vld [vmem:[#allocation8 + $0x590] sm:$0xff] }
 0x1b8   : > { %1595 = vmatprep.subr.mxu0 %v1348_v37  ;;  %1524 = vmatprep.subr.mxu1 %v1220_v9  ;;  %v1328_v37 = vld [vmem:[#allocation8 + $0x558] sm:$0xff] }
 0x212   : > { %v927_v13 = vpop.f32.mrf.mxu0  ;;  %v998_v14 = vpop.f32.mrf.mxu1 }
 0x213   : > { %v928_v53 = vadd.f32 %v927_v13, %v840_v11 }
 0x214   : > { %v929_v15 = vpop.f32.mrf.mxu0  ;;  %v1000_v18 = vpop.f32.mrf.mxu1 }
 0x215   : > { %v999_v16 = vadd.f32 %v998_v14, %v928_v53  ;;  %v930_v17 = vadd.f32 %v929_v15, %v844_v12  ;;  %v1219_v14 = vld [vmem:[#allocation8 + $0x1f0] sm:$0xff] }
 0x216   : > { %v1215_v15 = vld [vmem:[#allocation8 + $0x1d0] sm:$0xff] }
 0x217   : > { %v1001_v19 = vadd.f32 %v1000_v18, %v930_v17  ;;  %v1149_v20 = vmul.f32 0.01, %v999_v16  ;;  %vm1145_vm6 = vcmp.gt.f32.partialorder %v999_v16, 0.0  ;;  %v1211_v17 = vld [vmem:[#allocation8 + $0x1b0] sm:$0xff]  ;;  %v1208_v18 = vld [vmem:[#allocation8 + $0x198] sm:$0xff] }
 0x219   : > { %v1150_v21 = vmul.f32 0.01, %v1001_v19  ;;  %vm1146_vm7 = vcmp.gt.f32.partialorder %v1001_v19, 0.0  ;;  %v2372_v24 = vsel %vm1145_vm6, %v999_v16, %v1149_v20  ;;  %v1212_v16 = vld [vmem:[#allocation8 + $0x1b8] sm:$0xff] }
 0x21a   : > { %v1204_v20 = vld [vmem:[#allocation8 + $0x178] sm:$0xff] }
 0x21b   : > { %v2369_v22 = vsel %vm1146_vm7, %v1001_v19, %v1150_v21  ;;  %v1207_v19 = vld [vmem:[#allocation8 + $0x190] sm:$0xff] }
 0x21c   : > { %1446 = vmatprep.mubr.f32.mxu0 %v2369_v22  ;;  %v1203_v21 = vld [vmem:[#allocation8 + $0x170] sm:$0xff] }
 0x21d   : > { %1447 = vmatmul.mubr.f32.vlgmr.msra.gmra.mxu0 %v2372_v24 }
 0x21e   : > { %1596 = vmatpush1.msra.mxu0 %v1347_v23  ;;  %v1200_v23 = vld [vmem:[#allocation8 + $0x158] sm:$0xff] }
 0x21f   : > { %1597 = vmatprep.subr.mxu0 %v1344_v25  ;;  %v1199_v25 = vld [vmem:[#allocation8 + $0x150] sm:$0xff] }
 0x220   : > { %1598 = vmatpush1.msra.mxu0 %v1343_v26  ;;  %v1196_v26 = vld [vmem:[#allocation8 + $0x138] sm:$0xff] }
 0x221   : > { %1599 = vmatprep.subr.mxu0 %v1340_v29  ;;  %v1195_v29 = vld [vmem:[#allocation8 + $0x130] sm:$0xff] }
 0x222   : > { %1600 = vmatpush1.msra.mxu0 %v1339_v32  ;;  %v1191_v32 = vld [vmem:[#allocation8 + $0x110] sm:$0xff] }
 0x223   : > { %1601 = vmatprep.subr.mxu0 %v1336_v33  ;;  %v1188_v33 = vld [vmem:[#allocation8 + $0xf8] sm:$0xff] }
 0x224   : > { %1602 = vmatpush1.msra.mxu0 %v1335_v34  ;;  %v1187_v34 = vld [vmem:[#allocation8 + $0xf0] sm:$0xff] }
 0x225   : > { %1603 = vmatprep.subr.mxu0 %v1332_v35  ;;  %v1184_v35 = vld [vmem:[#allocation8 + $0xd8] sm:$0xff] }
 0x226   : > { %1604 = vmatpush1.msra.mxu0 %v1331_v36  ;;  %v1183_v36 = vld [vmem:[#allocation8 + $0xd0] sm:$0xff] }
 0x227   : > { %1605 = vmatprep.subr.mxu0 %v1328_v37  ;;  %v1180_v37 = vld [vmem:[#allocation8 + $0xb8] sm:$0xff] }
 0x228   : > { %1606 = vmatpush1.msra.mxu0 %v1327_v38  ;;  %v1179_v38 = vld [vmem:[#allocation8 + $0xb0] sm:$0xff] }
 0x229   : > { %1607 = vmatprep.subr.mxu0 %v1324_v39  ;;  %v1176_v39 = vld [vmem:[#allocation8 + $0x98] sm:$0xff] }
 0x22a   : > { %1608 = vmatpush1.msra.mxu0 %v1323_v40  ;;  %v1175_v40 = vld [vmem:[#allocation8 + $0x90] sm:$0xff] }
 0x22b   : > { %1609 = vmatprep.subr.mxu0 %v1320_v41  ;;  %v1172_v41 = vld [vmem:[#allocation8 + $0x78] sm:$0xff] }
 0x22c   : > { %1610 = vmatpush1.msra.mxu0 %v1319_v42  ;;  %v1171_v42 = vld [vmem:[#allocation8 + $0x70] sm:$0xff] }
 0x22d   : > { %1611 = vmatprep.subr.mxu0 %v1316_v43  ;;  %v1168_v43 = vld [vmem:[#allocation8 + $0x58] sm:$0xff] }
 0x22e   : > { %1612 = vmatpush1.msra.mxu0 %v1315_v44  ;;  %v1167_v44 = vld [vmem:[#allocation8 + $0x50] sm:$0xff] }
 0x22f   : > { %1613 = vmatprep.subr.mxu0 %v1312_v45  ;;  %v1164_v45 = vld [vmem:[#allocation8 + $0x38] sm:$0xff] }
 0x230   : > { %1614 = vmatpush1.msra.mxu0 %v1311_v46  ;;  %v1163_v46 = vld [vmem:[#allocation8 + $0x30] sm:$0xff] }
 0x231   : > { %1615 = vmatprep.subr.mxu0 %v1308_v47  ;;  %v1160_v47 = vld [vmem:[#allocation8 + $0x18] sm:$0xff] }
 0x232   : > { %1616 = vmatpush1.msra.mxu0 %v1307_v50  ;;  %v1159_v50 = vld [vmem:[#allocation8 + $0x10] sm:$0xff] }
 0x233   : > { %1617 = vmatprep.subr.mxu0 %v1304_v51  ;;  %v1284_v51 = vld [vmem:[#allocation8 + $0x3f8] sm:$0xff] }
 0x234   : > { %1618 = vmatpush1.msra.mxu0 %v1303_v52  ;;  %v1283_v52 = vld [vmem:[#allocation8 + $0x3f0] sm:$0xff] }
 0x235   : > { %1619 = vmatprep.subr.mxu0 %v1300_v54  ;;  %v1280_v54 = vld [vmem:[#allocation8 + $0x3d8] sm:$0xff] }
 0x236   : > { %1620 = vmatpush1.msra.mxu0 %v1299_v55  ;;  %v1279_v55 = vld [vmem:[#allocation8 + $0x3d0] sm:$0xff] }
 0x237   : > { %1621 = vmatprep.subr.mxu0 %v1296_v56  ;;  %v1140_v3 = vpop.f32.mrf.mxu0  ;;  %v1276_v56 = vld [vmem:[#allocation8 + $0x3b8] sm:$0xff] }
 0x238   : > { %1622 = vmatpush1.msra.mxu0 %v1295_v57  ;;  %v1275_v57 = vld [vmem:[#allocation8 + $0x3b0] sm:$0xff] }
 0x239   : > { %1623 = vmatprep.subr.mxu0 %v1292_v58  ;;  %v1142_v8 = vpop.f32.mrf.mxu0  ;;  %v1272_v58 = vld [vmem:[#allocation8 + $0x398] sm:$0xff] }
 0x23a   : > { %1624 = vmatpush1.msra.mxu0 %v1291_v59  ;;  %v1271_v59 = vld [vmem:[#allocation8 + $0x390] sm:$0xff] }
 0x23b   : > { %1625 = vmatprep.subr.mxu0 %v1288_v60  ;;  %v1268_v60 = vld [vmem:[#allocation8 + $0x378] sm:$0xff] }
 0x23c   : > { %1626 = vmatpush1.msra.mxu0 %v1287_v49  ;;  %v1267_v49 = vld [vmem:[#allocation8 + $0x370] sm:$0xff] }
 0x23d   : > { %1655 = vmatprep.subr.mxu0 %v1356_v61  ;;  %v1264_v61 = vld [vmem:[#allocation8 + $0x358] sm:$0xff] }
 0x23e   : > { %1656 = vmatpush2.msra.mxu0 %v1355_v62  ;;  %v1263_v62 = vld [vmem:[#allocation8 + $0x350] sm:$0xff] }
 0x23f   : > { %1657 = vmatprep.subr.mxu0 %v1352_v63  ;;  %v1260_v63 = vld [vmem:[#allocation8 + $0x338] sm:$0xff] }
 0x240   : > { %1658 = vmatpush2.msra.mxu0 %v1351_v0  ;;  %v1259_v0 = vld [vmem:[#allocation8 + $0x330] sm:$0xff] }
 0x253   : > { %v1069_v4 = vpop.f32.mrf.mxu1 }
 0x254   : > { %v1070_v5 = vadd.f32 %v1069_v4, %v848_v1  ;;  %v1256_v1 = vld [vmem:[#allocation8 + $0x318] sm:$0xff]  ;;  %v1251_v4 = vld [vmem:[#allocation8 + $0x2f0] sm:$0xff] }
 0x255   : > { %v1071_v6 = vpop.f32.mrf.mxu1 }
 0x256   : > { %v1141_v7 = vadd.f32 %v1140_v3, %v1070_v5  ;;  %v1072_v48 = vadd.f32 %v1071_v6, %v852_v2  ;;  %v1255_v2 = vld [vmem:[#allocation8 + $0x310] sm:$0xff]  ;;  %v1252_v3 = vld [vmem:[#allocation8 + $0x2f8] sm:$0xff] }
 0x257   : > { %v1248_v5 = vld [vmem:[#allocation8 + $0x2d8] sm:$0xff]  ;;  %v1247_v6 = vld [vmem:[#allocation8 + $0x2d0] sm:$0xff] }
 0x258   : > { %v1143_v9 = vadd.f32 %v1142_v8, %v1072_v48  ;;  %v1151_v11 = vmul.f32 0.01, %v1141_v7  ;;  %vm1147_vm9 = vcmp.gt.f32.partialorder %v1141_v7, 0.0  ;;  %v1243_v48 = vld [vmem:[#allocation8 + $0x2b0] sm:$0xff]  ;;  %v1240_v8 = vld [vmem:[#allocation8 + $0x298] sm:$0xff] }
 0x25a   : > { %v1152_v12 = vmul.f32 0.01, %v1143_v9  ;;  %vm1148_vm8 = vcmp.gt.f32.partialorder %v1143_v9, 0.0  ;;  %v1155_v53 = vsel %vm1147_vm9, %v1141_v7, %v1151_v11  ;;  %v1244_v7 = vld [vmem:[#allocation8 + $0x2b8] sm:$0xff] }
 0x25b   : > { %v1236_v11 = vld [vmem:[#allocation8 + $0x278] sm:$0xff] }
 0x25c   : > { %v1156_v13 = vsel %vm1148_vm8, %v1143_v9, %v1152_v12  ;;  %v1239_v9 = vld [vmem:[#allocation8 + $0x290] sm:$0xff] }
 0x25d   : > { %1849 = vmatprep.mubr.msk.f32.mxu1 %vm857_vm3, %v1156_v13  ;;  %1850 = vmatprep.mubr.msk.f32.mxu0 %vm857_vm3, %v1156_v13  ;;  %v1235_v12 = vld [vmem:[#allocation8 + $0x270] sm:$0xff]  ;;  %v1232_v13 = vld [vmem:[#allocation8 + $0x258] sm:$0xff] }
 0x25e   : > { %1518 = vmatmul.mubr.f32.vlgmr.msra.gmra.mxu1 %v1155_v53  ;;  %1660 = vmatmul.mubr.f32.vlgmr.msra.gmra.mxu0 %v1155_v53  ;;  %v1228_v53 = vld [vmem:[#allocation8 + $0x238] sm:$0xff] }
 0x25f   : > { %1525 = vmatpush1.msra.mxu1 %v1219_v14  ;;  %1588 = vmatprep.mubr.f32.mxu1 %v2369_v22  ;;  %v1192_v22 = vld [vmem:[#allocation8 + $0x118] sm:$0xff]  ;;  %v1231_v14 = vld [vmem:[#allocation8 + $0x250] sm:$0xff] }
 0x260   : > { %1526 = vmatprep.subr.mxu1 %v1216_v10  ;;  %v1227_v10 = vld [vmem:[#allocation8 + $0x230] sm:$0xff] }
 0x261   : > { %1527 = vmatpush1.msra.mxu1 %v1215_v15  ;;  %v1224_v15 = vld [vmem:[#allocation8 + $0x218] sm:$0xff] }
 0x262   : > { %1528 = vmatprep.subr.mxu1 %v1212_v16  ;;  %v1223_v16 = vld [vmem:[#allocation8 + $0x210] sm:$0xff] }
 0x263   : > { %1529 = vmatpush1.msra.mxu1 %v1211_v17 }
 0x264   : > { %1530 = vmatprep.subr.mxu1 %v1208_v18  ;;  %v1357_v18 = vld [vmem:[%s2419_s6] sm:$0xf] }
 0x265   : > { %1531 = vmatpush1.msra.mxu1 %v1207_v19 }
 0x266   : > { %1532 = vmatprep.subr.mxu1 %v1204_v20  ;;  %v1366_v20 = vrot.slane %v1357_v18, %v2338_v30 }
 0x267   : > { %1533 = vmatpush1.msra.mxu1 %v1203_v21 }
 0x268   : > { %1534 = vmatprep.subr.mxu1 %v1200_v23  ;;  %v1362_v23 = vrot.slane %v1357_v18, %v2331_v27 }
 0x269   : > { %1535 = vmatpush1.msra.mxu1 %v1199_v25 }
 0x26a   : > { %1536 = vmatprep.subr.mxu1 %v1196_v26 }
 0x26b   : > { %1537 = vmatpush1.msra.mxu1 %v1195_v29 }
 0x26c   : > { %1538 = vmatprep.subr.mxu1 %v1192_v22 }
 0x26d   : > { %1539 = vmatpush1.msra.mxu1 %v1191_v32 }
 0x26e   : > { %1540 = vmatprep.subr.mxu1 %v1188_v33 }
 0x26f   : > { %1541 = vmatpush1.msra.mxu1 %v1187_v34  ;;  %v1370_v34 = vrot.slane %v1357_v18, %v2333_v28 }
 0x270   : > { %1542 = vmatprep.subr.mxu1 %v1184_v35  ;;  %v1374_v35 = vrot.slane %v1357_v18, %v2340_v31 }
 0x271   : > { %1543 = vmatpush1.msra.mxu1 %v1183_v36  ;;  %v1678_v36 = vld [vmem:[#allocation10] sm:$0xf] }
 0x272   : > { %1544 = vmatprep.subr.mxu1 %v1180_v37 }
 0x273   : > { %1545 = vmatpush1.msra.mxu1 %v1179_v38 }
 0x274   : > { %1546 = vmatprep.subr.mxu1 %v1176_v39  ;;  %v1687_v39 = vrot.slane %v1678_v36, %v2338_v30 }
 0x275   : > { %1547 = vmatpush1.msra.mxu1 %v1175_v40 }
 0x276   : > { %1548 = vmatprep.subr.mxu1 %v1172_v41 }
 0x277   : > { %1549 = vmatpush1.msra.mxu1 %v1171_v42 }
 0x278   : > { %1550 = vmatprep.subr.mxu1 %v1168_v43  ;;  %v1683_v43 = vrot.slane %v1678_v36, %v2331_v27 }
 0x279   : > { %1551 = vmatpush1.msra.mxu1 %v1167_v44 }
 0x27a   : > { %1552 = vmatprep.subr.mxu1 %v1164_v45 }
 0x27b   : > { %1553 = vmatpush1.msra.mxu1 %v1163_v46 }
 0x27c   : > { %1554 = vmatprep.subr.mxu1 %v1160_v47 }
 0x27d   : > { %1555 = vmatpush1.msra.mxu1 %v1159_v50  ;;  %v1691_v50 = vrot.slane %v1678_v36, %v2333_v28 }
 0x27e   : > { %1556 = vmatprep.subr.mxu1 %v1284_v51 }
 0x27f   : > { %1557 = vmatpush2.msra.mxu1 %v1283_v52 }
 0x280   : > { %1558 = vmatprep.subr.mxu1 %v1280_v54 }
 0x281   : > { %1559 = vmatpush2.msra.mxu1 %v1279_v55  ;;  %v1695_v55 = vrot.slane %v1678_v36, %v2340_v31 }
 0x282   : > { %1560 = vmatprep.subr.mxu1 %v1276_v56 }
 0x283   : > { %1561 = vmatpush2.msra.mxu1 %v1275_v57 }
 0x284   : > { %1562 = vmatprep.subr.mxu1 %v1272_v58 }
 0x285   : > { %1563 = vmatpush2.msra.mxu1 %v1271_v59 }
 0x286   : > { %1564 = vmatprep.subr.mxu1 %v1268_v60 }
 0x287   : > { %1565 = vmatpush2.msra.mxu1 %v1267_v49 }
 0x288   : > { %1566 = vmatprep.subr.mxu1 %v1264_v61 }
 0x289   : > { %1567 = vmatpush2.msra.mxu1 %v1263_v62  ;;  %v1851_v62 = vld [vmem:[#allocation2] ss:$0 sm:$0xff] }
 0x28a   : > { %1568 = vmatprep.subr.mxu1 %v1260_v63 }
 0x28b   : > { %1569 = vmatpush2.msra.mxu1 %v1259_v0 }
 0x28c   : > { %1570 = vmatprep.subr.mxu1 %v1256_v1 }
 0x28d   : > { %1571 = vmatpush2.msra.mxu1 %v1255_v2 }
 0x28e   : > { %1572 = vmatprep.subr.mxu1 %v1252_v3 }
 0x28f   : > { %1573 = vmatpush2.msra.mxu1 %v1251_v4 }
 0x290   : > { %1574 = vmatprep.subr.mxu1 %v1248_v5 }
 0x291   : > { %1575 = vmatpush2.msra.mxu1 %v1247_v6 }
 0x292   : > { %1576 = vmatprep.subr.mxu1 %v1244_v7 }
 0x293   : > { %1577 = vmatpush2.msra.mxu1 %v1243_v48 }
 0x294   : > { %1578 = vmatprep.subr.mxu1 %v1240_v8 }
 0x295   : > { %1579 = vmatpush2.msra.mxu1 %v1239_v9 }
 0x296   : > { %1580 = vmatprep.subr.mxu1 %v1236_v11 }
 0x297   : > { %1581 = vmatpush2.msra.mxu1 %v1235_v12 }
 0x298   : > { %1582 = vmatprep.subr.mxu1 %v1232_v13 }
 0x299   : > { %1583 = vmatpush2.msra.mxu1 %v1231_v14 }
 0x29a   : > { %1584 = vmatprep.subr.mxu1 %v1228_v53 }
 0x29b   : > { %1585 = vmatpush2.msra.mxu1 %v1227_v10 }
 0x29c   : > { %1586 = vmatprep.subr.mxu1 %v1224_v15 }
 0x29d   : > { %1587 = vmatpush2.msra.mxu1 %v1223_v16 }
 0x29e   : > { %1589 = vmatmul.mubr.f32.vlgmr.msra.gmra.mxu1 %v2372_v24 }
 0x2dd   : > { %v1448_v17 = vpop.f32.mrf.mxu0 }
 0x2de   : > { %v1449_v29 = vadd.f32 %v1448_v17, %v1362_v23 }
 0x2df   : > { %v1450_v21 = vpop.f32.mrf.mxu0 }
 0x2e0   : > { %v1451_v26 = vadd.f32 %v1450_v21, %v1366_v20 }
 0x31e   : > { %v1519_v19 = vpop.f32.mrf.mxu1  ;;  %v1661_v37 = vpop.f32.mrf.mxu0 }
 0x31f   : > { %v1520_v32 = vadd.f32 %v1519_v19, %v1449_v29 }
 0x320   : > { %v1521_v25 = vpop.f32.mrf.mxu1  ;;  %v1663_v47 = vpop.f32.mrf.mxu0 }
 0x321   : > { %v1522_v22 = vadd.f32 %v1521_v25, %v1451_v26  ;;  %v1670_v24 = vmul.f32 0.01, %v1520_v32  ;;  %vm1666_vm11 = vcmp.gt.f32.partialorder %v1520_v32, 0.0 }
 0x323   : > { %v1671_v33 = vmul.f32 0.01, %v1522_v22  ;;  %vm1667_vm10 = vcmp.gt.f32.partialorder %v1522_v22, 0.0  ;;  %v1674_v44 = vsel %vm1666_vm11, %v1520_v32, %v1670_v24 }
 0x324   : > { %v1700_v56 = vmul.f32 %v1683_v43, %v1674_v44 }
 0x325   : > { %v1675_v40 = vsel %vm1667_vm10, %v1522_v22, %v1671_v33 }
 0x326   : > { %v1701_v51 = vmul.f32 %v1687_v39, %v1675_v40 }
 0x328   : > { %v1704_v59 = vadd.f32 %v1701_v51, %v1700_v56 }
 0x35e   : > { %v1590_v38 = vpop.f32.mrf.mxu1 }
 0x35f   : > { %v1591_v41 = vadd.f32 %v1590_v38, %v1370_v34 }
 0x360   : > { %v1592_v42 = vpop.f32.mrf.mxu1 }
 0x361   : > { %v1662_v45 = vadd.f32 %v1661_v37, %v1591_v41  ;;  %v1593_v46 = vadd.f32 %v1592_v42, %v1374_v35 }
 0x363   : > { %vm1668_vm12 = vcmp.gt.f32.partialorder %v1662_v45, 0.0  ;;  %v1672_v52 = vmul.f32 0.01, %v1662_v45  ;;  %v1664_v54 = vadd.f32 %v1663_v47, %v1593_v46 }
 0x365   : > { %v1673_v57 = vmul.f32 0.01, %v1664_v54  ;;  %vm1669_vm13 = vcmp.gt.f32.partialorder %v1664_v54, 0.0  ;;  %v1676_v30 = vsel %vm1668_vm12, %v1662_v45, %v1672_v52 }
 0x366   : > { %v1702_v58 = vmul.f32 %v1691_v50, %v1676_v30 }
 0x367   : > { %v1677_v27 = vsel %vm1669_vm13, %v1664_v54, %v1673_v57 }
 0x368   : > { %v1703_v60 = vmul.f32 %v1695_v55, %v1677_v27  ;;  %v1705_v49 = vadd.f32 %v1704_v59, %v1702_v58 }
 0x36a   : > { %v1706_v61 = vsel %vm857_vm3, %v1703_v60, 0.0 }
 0x36b   : > { %v1707_v28 = vadd.f32 %v1706_v61, %v1705_v49 }
 0x36d   : > { %1708 = vadd.xlane.f32.xlu0 %v1707_v28 }
 0x3f6   : > { %v1709_v63 = vpop.xlane.xlu0 %1708 }
 0x3f7   : > { %v1717_v0 = vadd.f32 %v1851_v62, %v1709_v63 }
 0x3f9   : > { %v1852_v1 = vmul.f32 -1.442695, %v1717_v0 }
 0x3fb   : > { %1938 = vpow2.f32 %v1852_v1 }
 0x408   : > { %v1939_v31 = vpop.eup %1938 }
 0x409   : > { %v1721_v2 = vadd.f32 1.0, %v1939_v31 }
 0x40b   : > { %1940 = vrcp.f32 %v1721_v2 }
 0x418   : > { %v1941_v3 = vpop.eup %1940 }
 0x419   : > { %1725 = vst.msk [vmem:[%s405_s30] sm:$0xff] %vm1724_vm14, %v1941_v3 }
 0x41a PF: > { %p23_p2 = scmp.ge.s32.totalorder %s2266_s22, 4   ;;  %s2436_s11 = smov %s2108_s12 }
 0x41b   : > { %s2437_s12 = smov %s2112_s13  ;;  %s2438_s13 = smov %s2278_s25 }
 0x41c   : > { %s2439_s14 = smov %s2266_s22  ;;  %25 = sbr.rel (!%p23_p2) target bundleno = 8 (0x8), region = 112 }
 0x421   :  { %1745 = vsyncpa [#allocation4], 1 }
 0x422   :  { %1747 = vsyncpa [#allocation4 + $0x1], 1 }
 0x423   :  { %1748 = vsyncpa [#allocation6], 1 }
 0x424   :  { %1749 = vsyncpa [#allocation9], 1 }

</bundles_post_ra>
